<compile_context>
chip_gen: v6e
topology: v6e:2x2x1
jax: 0.10.0
libtpu: 0.0.40
codegen_flags: <defaults>
</compile_context>

<pallas_src>
import jax
import jax.numpy as jnp
from jax import lax
from jax.experimental import pallas as pl
from jax.experimental.pallas import tpu as pltpu


# -----------------------------------------------------------------------------
# Pallas kernel
# -----------------------------------------------------------------------------
def _make_kernel(*, bt, L, in_ch, out_ch, k1, dilation, kd, pad1, pad_max, act_dtype):
    C = out_ch
    pad_d = kd // 2

    def _conv_taps(xpad, w_ref, *, dil, pad, center):
        # xpad: loaded (bt, Lp, Cin) bf16 value with zero halos; column `center` aligns
        #       with position 0 of the un-padded signal.
        # w_ref: (K, Cin, Cout) ref.  One MXU matmul per tap, f32 accumulation.
        K, Cin, Cout = w_ref.shape
        acc = jnp.zeros((bt * L, Cout), jnp.float32)
        for k in range(K):
            s = center + k * dil - pad                     # static python int, >= 0
            xs = xpad[:, s:s + L, :].reshape(bt * L, Cin)
            acc = acc + jnp.dot(xs, w_ref[k], preferred_element_type=jnp.float32)
        return acc                                          # (bt*L, Cout) f32

    def _group_norm(h, gamma, beta, A, eps=1e-5):
        # h: (bt, L, C) f32; gamma/beta: (1, C) f32
        # A: (C, C) group-averaging matrix, pre-scaled by 1/(L * channels_per_group).
        # Two-pass (mean, then centered variance) for numerical safety.
        csum = jnp.sum(h, axis=1)                                          # (bt, C)
        mean = jnp.dot(csum, A, preferred_element_type=jnp.float32)        # (bt, C)
        xc = h - mean.reshape(bt, 1, C)
        ssq = jnp.sum(xc * xc, axis=1)                                     # (bt, C)
        var = jnp.dot(ssq, A, preferred_element_type=jnp.float32)
        inv = lax.rsqrt(var.reshape(bt, 1, C) + eps)
        return xc * inv * gamma + beta

    def kernel(x_ref, film_ref, w1_ref, w2_ref, wd_ref, wr_ref, wfu_ref,
               vec_ref, bd_ref, A_ref, out_ref, xpad_ref, hpad_ref):
        vecs = vec_ref[...]                      # (8, C) f32 stacked bias/gamma/beta table
        A = A_ref[...]                           # (C, C) f32
        b1, g1, be1 = vecs[0:1], vecs[1:2], vecs[2:3]
        b2, g2, be2 = vecs[3:4], vecs[4:5], vecs[5:6]
        br, bfu = vecs[6:7], vecs[7:8]
        sc1 = film_ref[:, 0:1, :]                # FiLM precomputed outside the kernel
        sh1 = film_ref[:, 1:2, :]
        sc2 = film_ref[:, 2:3, :]
        sh2 = film_ref[:, 3:4, :]

        # Build zero halos in-kernel (no wrapper jnp.pad HBM pass).  Only the halo slabs
        # are written; the interior is fully overwritten before every read.
        if pad1 > 0:
            zx = jnp.zeros((bt, pad1, in_ch), act_dtype)
            xpad_ref[:, 0:pad1, :] = zx
            xpad_ref[:, pad1 + L:pad1 + L + pad1, :] = zx
        zh = jnp.zeros((bt, pad_max, C), act_dtype)
        hpad_ref[:, 0:pad_max, :] = zh
        hpad_ref[:, pad_max + L:pad_max + L + pad_max, :] = zh

        xpad_ref[:, pad1:pad1 + L, :] = x_ref[...]
        xp = xpad_ref[...]                       # (bt, L + 2*pad1, Cin) bf16

        # residual 1x1 conv on the centre (un-shifted) slice of x
        xc = xp[:, pad1:pad1 + L, :].reshape(bt * L, in_ch)
        res = (jnp.dot(xc, wr_ref[...], preferred_element_type=jnp.float32)
               .reshape(bt, L, C) + br)

        # conv1 -> GroupNorm -> FiLM -> SiLU
        h = _conv_taps(xp, w1_ref, dil=dilation, pad=pad1, center=pad1)
        h = h.reshape(bt, L, C) + b1
        h = _group_norm(h, g1, be1, A)
        h = h * (1.0 + sc1) + sh1
        h1 = h * jax.nn.sigmoid(h)

        # conv2 -> GroupNorm -> FiLM -> SiLU  (through the zero-halo bf16 scratch)
        hpad_ref[:, pad_max:pad_max + L, :] = h1.astype(act_dtype)
        h = _conv_taps(hpad_ref[...], w2_ref, dil=dilation, pad=pad1, center=pad_max)
        h = h.reshape(bt, L, C) + b2
        h = _group_norm(h, g2, be2, A)
        h = h * (1.0 + sc2) + sh2
        h2 = h * jax.nn.sigmoid(h)

        # SquareWaveDetector: edge/plateau/level merged into one 3C-wide 15-tap conv,
        # lane-masked activations via ONE sigmoid (tanh(x) = 2*sigmoid(2x) - 1),
        # then a single fusion matmul.
        hpad_ref[:, pad_max:pad_max + L, :] = h2.astype(act_dtype)
        d3 = _conv_taps(hpad_ref[...], wd_ref, dil=1, pad=pad_d, center=pad_max)
        d3 = d3 + bd_ref[...]                                   # (bt*L, 3C) f32
        lane = lax.broadcasted_iota(jnp.int32, d3.shape, 1)
        is_plateau = (lane >= C) & (lane < 2 * C)
        sg = jax.nn.sigmoid(jnp.where(is_plateau, d3, 2.0 * d3))
        combined = jnp.where(is_plateau, sg, 2.0 * sg - 1.0)
        fused = (jnp.dot(combined.astype(act_dtype), wfu_ref[...],
                         preferred_element_type=jnp.float32)
                 .reshape(bt, L, C) + bfu)

        out_ref[...] = (fused + res).astype(out_ref.dtype)

    return kernel


# -----------------------------------------------------------------------------
# Wrapper: layout conversion, weight coalescing + pallas_call
# -----------------------------------------------------------------------------
def enhanced_conv_block(x_ncl, cond, params, *, num_groups, dilation=1):
    B, in_ch, L = x_ncl.shape
    out_ch, _, k1 = params["conv1_w"].shape
    C = out_ch
    kd = 15                                  # merged detector kernel (max of 5, 15, 7)
    pad1 = (k1 // 2) * dilation
    pad_d = kd // 2
    pad_max = max(pad1, pad_d)
    act_dtype = jnp.bfloat16                 # storage dtype for the wide operands

    # ---- layout conversion / precompute in plain JAX (outside the kernel) ----
    # TODO(synk): accept/emit NLC at the block boundary to drop these two transpose passes
    # when the surrounding model already uses channels-last.
    x_blc = jnp.transpose(x_ncl, (0, 2, 1)).astype(act_dtype)          # (B, L, Cin)

    # FiLM scale/shift: one tiny GEMM, passed as a single (B, 4, C) f32 operand.
    cond_f = cond.astype(jnp.float32)
    ss1 = cond_f @ params["film1_w"].T + params["film1_b"]             # (B, 2C)
    ss2 = cond_f @ params["film2_w"].T + params["film2_b"]
    film = jnp.stack([ss1[:, :C], ss1[:, C:], ss2[:, :C], ss2[:, C:]],
                     axis=1).astype(jnp.float32)

    def cw(w):    # torch (Cout, Cin, K) -> (K, Cin, Cout), bf16
        return jnp.transpose(w, (2, 1, 0)).astype(act_dtype)

    w1 = cw(params["conv1_w"])
    w2 = cw(params["conv2_w"])

    # Merge edge/plateau/level detectors into one (kd, C, 3C) conv weight (odd kernels).
    wd = jnp.zeros((kd, C, 3 * C), jnp.float32)
    for name, col0 in (("edge_w", 0), ("plateau_w", C), ("level_w", 2 * C)):
        w = params[name]
        K = w.shape[2]
        for k in range(K):
            wd = wd.at[pad_d + (k - K // 2), :, col0:col0 + C].set(
                w[:, :, k].T.astype(jnp.float32))
    wd = wd.astype(act_dtype)

    # residual: 1x1 conv, or identity when in_ch == out_ch (as in the PyTorch module)
    if "res_w" in params:
        wr = params["res_w"][:, :, 0].T.astype(act_dtype)              # (Cin, C)
        res_b = params["res_b"].astype(jnp.float32)
    else:
        assert in_ch == out_ch, "identity residual requires in_ch == out_ch"
        wr = jnp.eye(C, dtype=act_dtype)
        res_b = jnp.zeros((C,), jnp.float32)

    wfu = params["fusion_w"][:, :, 0].T.astype(act_dtype)              # (3C, C)

    # coalesced per-channel f32 vectors: one (8, C) table
    vecs = jnp.stack([params["conv1_b"], params["norm1_w"], params["norm1_b"],
                      params["conv2_b"], params["norm2_w"], params["norm2_b"],
                      res_b, params["fusion_b"]], axis=0).astype(jnp.float32)
    bd = jnp.concatenate([params["edge_b"], params["plateau_b"],
                          params["level_b"]])[None, :].astype(jnp.float32)   # (1, 3C)

    # group-averaging matrix (mean over L and over channels of the same group)
    cg = C // num_groups
    ch = jnp.arange(C)
    A = (((ch[:, None] // cg) == (ch[None, :] // cg)).astype(jnp.float32)
         / float(L * cg))

    # ---- batch tiling: fold batch into the matmul M dim -----------------------------
    # Target ~512 sublane rows per step, pad B instead of degrading for non-divisor B,
    # and keep >= 2 grid steps whenever B >= 2 so both v7x TensorCores get work.
    bt = max(1, min(B, 512 // max(L, 1)))
    grid_b = -(-B // bt)
    if grid_b < 2 and B >= 2:
        bt = -(-B // 2)
        grid_b = -(-B // bt)
    B_pad = grid_b * bt
    if B_pad != B:
        x_blc = jnp.pad(x_blc, ((0, B_pad - B), (0, 0), (0, 0)))
        film = jnp.pad(film, ((0, B_pad - B), (0, 0), (0, 0)))

    kern = _make_kernel(bt=bt, L=L, in_ch=in_ch, out_ch=C, k1=k1,
                        dilation=dilation, kd=kd, pad1=pad1, pad_max=pad_max,
                        act_dtype=act_dtype)

    def rep(arr):   # replicated (constant-block-index) operand
        nd = arr.ndim
        return pl.BlockSpec(arr.shape, lambda b, _n=nd: (0,) * _n)

    weights = [w1, w2, wd, wr, wfu, vecs, bd, A]
    in_specs = ([pl.BlockSpec((bt, L, in_ch), lambda b: (b, 0, 0)),
                 pl.BlockSpec((bt, 4, C), lambda b: (b, 0, 0))]
                + [rep(w) for w in weights])

    out_blc = pl.pallas_call(
        kern,
        out_shape=jax.ShapeDtypeStruct((B_pad, L, C), act_dtype),
        grid=(grid_b,),
        in_specs=in_specs,
        out_specs=pl.BlockSpec((bt, L, C), lambda b: (b, 0, 0)),
        scratch_shapes=[pltpu.VMEM((bt, L + 2 * pad1, in_ch), act_dtype),
                        pltpu.VMEM((bt, L + 2 * pad_max, C), act_dtype)],
        compiler_params=pltpu.CompilerParams(
            dimension_semantics=("parallel",),
            vmem_limit_bytes=48 * 1024 * 1024),
    )(x_blc, film, *weights)

    out_blc = out_blc[:B]
    return jnp.transpose(out_blc, (0, 2, 1)).astype(jnp.float32)       # back to NCL


# -----------------------------------------------------------------------------
# Pure-JAX reference (mirrors the PyTorch module)
# -----------------------------------------------------------------------------
def _conv1d_ref(x, w, b, dilation=1):
    K = w.shape[-1]
    pad = (K // 2) * dilation
    y = lax.conv_general_dilated(x, w, window_strides=(1,), padding=[(pad, pad)],
                                 rhs_dilation=(dilation,),
                                 dimension_numbers=("NCH", "OIH", "NCH"))
    return y + b[None, :, None]


def _group_norm_ref(x, gamma, beta, num_groups, eps=1e-5):
    B, C, L = x.shape
    xg = x.reshape(B, num_groups, (C // num_groups) * L)
    mean = xg.mean(axis=-1, keepdims=True)
    var = ((xg - mean) ** 2).mean(axis=-1, keepdims=True)
    xn = ((xg - mean) / jnp.sqrt(var + eps)).reshape(B, C, L)
    return xn * gamma[None, :, None] + beta[None, :, None]


def _film_ref(x, cond, w, b):
    ss = cond @ w.T + b
    scale, shift = jnp.split(ss, 2, axis=1)
    return x * (1.0 + scale[:, :, None]) + shift[:, :, None]


def forward_ref(x, cond, p, num_groups, dilation=1):
    res = _conv1d_ref(x, p["res_w"], p["res_b"])
    h = _conv1d_ref(x, p["conv1_w"], p["conv1_b"], dilation)
    h = _group_norm_ref(h, p["norm1_w"], p["norm1_b"], num_groups)
    h = _film_ref(h, cond, p["film1_w"], p["film1_b"])
    h1 = h * jax.nn.sigmoid(h)
    h = _conv1d_ref(h1, p["conv2_w"], p["conv2_b"], dilation)
    h = _group_norm_ref(h, p["norm2_w"], p["norm2_b"], num_groups)
    h = _film_ref(h, cond, p["film2_w"], p["film2_b"])
    h2 = h * jax.nn.sigmoid(h)
    edges = jnp.tanh(_conv1d_ref(h2, p["edge_w"], p["edge_b"]))
    plats = jax.nn.sigmoid(_conv1d_ref(h2, p["plateau_w"], p["plateau_b"]))
    levels = jnp.tanh(_conv1d_ref(h2, p["level_w"], p["level_b"]))
    combined = jnp.concatenate([edges, plats, levels], axis=1)
    h3 = _conv1d_ref(combined, p["fusion_w"], p["fusion_b"])
    return h3 + res


# -----------------------------------------------------------------------------
# main
# -----------------------------------------------------------------------------
if __name__ == "__main__":
    B, in_ch, out_ch, cond_dim, L = 2, 4, 8, 8, 16
    kernel_size, dilation = 3, 1
    num_groups = min(32, out_ch // 4)   # = 2

    keys = iter(jax.random.split(jax.random.PRNGKey(0), 64))

    def rnd(shape, scale=0.1):
        return (scale * jax.random.normal(next(keys), shape)).astype(jnp.float32)

    params = {
        "conv1_w": rnd((out_ch, in_ch, kernel_size)), "conv1_b": rnd((out_ch,)),
        "norm1_w": 1.0 + rnd((out_ch,)), "norm1_b": rnd((out_ch,)),
        "conv2_w": rnd((out_ch, out_ch, kernel_size)), "conv2_b": rnd((out_ch,)),
        "norm2_w": 1.0 + rnd((out_ch,)), "norm2_b": rnd((out_ch,)),
        "film1_w": rnd((2 * out_ch, cond_dim)), "film1_b": rnd((2 * out_ch,)),
        "film2_w": rnd((2 * out_ch, cond_dim)), "film2_b": rnd((2 * out_ch,)),
        "res_w": rnd((out_ch, in_ch, 1)), "res_b": rnd((out_ch,)),
        "edge_w": rnd((out_ch, out_ch, 5)), "edge_b": rnd((out_ch,)),
        "plateau_w": rnd((out_ch, out_ch, 15)), "plateau_b": rnd((out_ch,)),
        "level_w": rnd((out_ch, out_ch, 7)), "level_b": rnd((out_ch,)),
        "fusion_w": rnd((out_ch, 3 * out_ch, 1)), "fusion_b": rnd((out_ch,)),
    }

    x = jax.random.normal(next(keys), (B, in_ch, L), dtype=jnp.float32)      # NCL
    cond = jax.random.normal(next(keys), (B, cond_dim), dtype=jnp.float32)

    out_kernel = enhanced_conv_block(x, cond, params,
                                     num_groups=num_groups, dilation=dilation)
    out_kernel = jax.block_until_ready(out_kernel)

    out_reference = forward_ref(x, cond, params, num_groups, dilation)
    err = float(jnp.max(jnp.abs(out_kernel - out_reference)))
    assert out_kernel.shape == (B, out_ch, L), out_kernel.shape
    # bf16 storage + single-pass bf16 MXU matmuls with f32 accumulation.
    assert err < 5e-2, f"max abs error {err}"

    print("KERNEL_OK")
</pallas_src>

<mosaic_0001>
module attributes {stable_mosaic.version = 11 : i64} {
  func.func @kernel(%arg0: i32, %arg1: memref<1x16x4xbf16, #tpu.memory_space<vmem>>, %arg2: memref<1x4x8xf32, #tpu.memory_space<vmem>>, %arg3: memref<3x4x8xbf16, #tpu.memory_space<vmem>>, %arg4: memref<3x8x8xbf16, #tpu.memory_space<vmem>>, %arg5: memref<15x8x24xbf16, #tpu.memory_space<vmem>>, %arg6: memref<4x8xbf16, #tpu.memory_space<vmem>>, %arg7: memref<24x8xbf16, #tpu.memory_space<vmem>>, %arg8: memref<8x8xf32, #tpu.memory_space<vmem>>, %arg9: memref<1x24xf32, #tpu.memory_space<vmem>>, %arg10: memref<8x8xf32, #tpu.memory_space<vmem>>, %arg11: memref<1x16x8xbf16, #tpu.memory_space<vmem>>, %arg12: memref<1x18x4xbf16, #tpu.memory_space<vmem>>, %arg13: memref<1x30x8xbf16, #tpu.memory_space<vmem>>) attributes {dimension_semantics = [#tpu.dimension_semantics<parallel>], iteration_bounds = array<i64: 2>, scalar_prefetch = 0 : i64, scratch_operands = 2 : i64, tpu.core_type = #tpu.core_type<tc>, window_params = [{transform_indices = @transform_0, window_bounds = array<i64: 1, 16, 4>}, {transform_indices = @transform_1, window_bounds = array<i64: 1, 4, 8>}, {pipeline_mode = #tpu.pipeline_mode<synchronous>, transform_indices = @transform_2, window_bounds = array<i64: 3, 4, 8>}, {pipeline_mode = #tpu.pipeline_mode<synchronous>, transform_indices = @transform_3, window_bounds = array<i64: 3, 8, 8>}, {pipeline_mode = #tpu.pipeline_mode<synchronous>, transform_indices = @transform_4, window_bounds = array<i64: 15, 8, 24>}, {pipeline_mode = #tpu.pipeline_mode<synchronous>, transform_indices = @transform_5, window_bounds = array<i64: 4, 8>}, {pipeline_mode = #tpu.pipeline_mode<synchronous>, transform_indices = @transform_6, window_bounds = array<i64: 24, 8>}, {pipeline_mode = #tpu.pipeline_mode<synchronous>, transform_indices = @transform_7, window_bounds = array<i64: 8, 8>}, {pipeline_mode = #tpu.pipeline_mode<synchronous>, transform_indices = @transform_8, window_bounds = array<i64: 1, 24>}, {pipeline_mode = #tpu.pipeline_mode<synchronous>, transform_indices = @transform_9, window_bounds = array<i64: 8, 8>}, {transform_indices = @transform_10, window_bounds = array<i64: 1, 16, 8>}]} {
    %c0 = arith.constant 0 : index
    %c0_0 = arith.constant 0 : index
    %0 = vector.load %arg8[%c0, %c0_0] : memref<8x8xf32, #tpu.memory_space<vmem>>, vector<8x8xf32>
    %c0_1 = arith.constant 0 : index
    %c0_2 = arith.constant 0 : index
    %1 = vector.load %arg10[%c0_1, %c0_2] : memref<8x8xf32, #tpu.memory_space<vmem>>, vector<8x8xf32>
    %2 = vector.extract_strided_slice %0 {offsets = [0, 0], sizes = [1, 8], strides = [1, 1]} : vector<8x8xf32> to vector<1x8xf32>
    %3 = vector.extract_strided_slice %0 {offsets = [1, 0], sizes = [1, 8], strides = [1, 1]} : vector<8x8xf32> to vector<1x8xf32>
    %4 = vector.extract_strided_slice %0 {offsets = [2, 0], sizes = [1, 8], strides = [1, 1]} : vector<8x8xf32> to vector<1x8xf32>
    %5 = vector.extract_strided_slice %0 {offsets = [3, 0], sizes = [1, 8], strides = [1, 1]} : vector<8x8xf32> to vector<1x8xf32>
    %6 = vector.extract_strided_slice %0 {offsets = [4, 0], sizes = [1, 8], strides = [1, 1]} : vector<8x8xf32> to vector<1x8xf32>
    %7 = vector.extract_strided_slice %0 {offsets = [5, 0], sizes = [1, 8], strides = [1, 1]} : vector<8x8xf32> to vector<1x8xf32>
    %8 = vector.extract_strided_slice %0 {offsets = [6, 0], sizes = [1, 8], strides = [1, 1]} : vector<8x8xf32> to vector<1x8xf32>
    %9 = vector.extract_strided_slice %0 {offsets = [7, 0], sizes = [1, 8], strides = [1, 1]} : vector<8x8xf32> to vector<1x8xf32>
    %c0_3 = arith.constant 0 : index
    %c0_4 = arith.constant 0 : index
    %c0_5 = arith.constant 0 : index
    %10 = vector.load %arg2[%c0_3, %c0_4, %c0_5] : memref<1x4x8xf32, #tpu.memory_space<vmem>>, vector<1x1x8xf32>
    %c0_6 = arith.constant 0 : index
    %c1 = arith.constant 1 : index
    %c0_7 = arith.constant 0 : index
    %11 = vector.load %arg2[%c0_6, %c1, %c0_7] : memref<1x4x8xf32, #tpu.memory_space<vmem>>, vector<1x1x8xf32>
    %c0_8 = arith.constant 0 : index
    %c2 = arith.constant 2 : index
    %c0_9 = arith.constant 0 : index
    %12 = vector.load %arg2[%c0_8, %c2, %c0_9] : memref<1x4x8xf32, #tpu.memory_space<vmem>>, vector<1x1x8xf32>
    %c0_10 = arith.constant 0 : index
    %c3 = arith.constant 3 : index
    %c0_11 = arith.constant 0 : index
    %13 = vector.load %arg2[%c0_10, %c3, %c0_11] : memref<1x4x8xf32, #tpu.memory_space<vmem>>, vector<1x1x8xf32>
    %cst = arith.constant 0.000000e+00 : bf16
    %14 = vector.broadcast %cst : bf16 to vector<1x1x4xbf16>
    %c0_12 = arith.constant 0 : index
    %c0_13 = arith.constant 0 : index
    %c0_14 = arith.constant 0 : index
    %15 = vector.load %arg12[%c0_12, %c0_13, %c0_14] : memref<1x18x4xbf16, #tpu.memory_space<vmem>>, vector<1x1x4xbf16>
    tpu.vector_store %arg12[%c0_12, %c0_13, %c0_14], %14 {strides = array<i32>} : memref<1x18x4xbf16, #tpu.memory_space<vmem>>, vector<1x1x4xbf16>,
    %c0_15 = arith.constant 0 : index
    %c17 = arith.constant 17 : index
    %c0_16 = arith.constant 0 : index
    %16 = vector.load %arg12[%c0_15, %c17, %c0_16] : memref<1x18x4xbf16, #tpu.memory_space<vmem>>, vector<1x1x4xbf16>
    tpu.vector_store %arg12[%c0_15, %c17, %c0_16], %14 {strides = array<i32>} : memref<1x18x4xbf16, #tpu.memory_space<vmem>>, vector<1x1x4xbf16>,
    %cst_17 = arith.constant 0.000000e+00 : bf16
    %17 = vector.broadcast %cst_17 : bf16 to vector<1x7x8xbf16>
    %c0_18 = arith.constant 0 : index
    %c0_19 = arith.constant 0 : index
    %c0_20 = arith.constant 0 : index
    %18 = vector.load %arg13[%c0_18, %c0_19, %c0_20] : memref<1x30x8xbf16, #tpu.memory_space<vmem>>, vector<1x7x8xbf16>
    tpu.vector_store %arg13[%c0_18, %c0_19, %c0_20], %17 {strides = array<i32>} : memref<1x30x8xbf16, #tpu.memory_space<vmem>>, vector<1x7x8xbf16>,
    %c0_21 = arith.constant 0 : index
    %c23 = arith.constant 23 : index
    %c0_22 = arith.constant 0 : index
    %19 = vector.load %arg13[%c0_21, %c23, %c0_22] : memref<1x30x8xbf16, #tpu.memory_space<vmem>>, vector<1x7x8xbf16>
    tpu.vector_store %arg13[%c0_21, %c23, %c0_22], %17 {strides = array<i32>} : memref<1x30x8xbf16, #tpu.memory_space<vmem>>, vector<1x7x8xbf16>,
    %c0_23 = arith.constant 0 : index
    %c0_24 = arith.constant 0 : index
    %c0_25 = arith.constant 0 : index
    %20 = vector.load %arg1[%c0_23, %c0_24, %c0_25] : memref<1x16x4xbf16, #tpu.memory_space<vmem>>, vector<1x16x4xbf16>
    %c0_26 = arith.constant 0 : index
    %c1_27 = arith.constant 1 : index
    %c0_28 = arith.constant 0 : index
    %21 = vector.load %arg12[%c0_26, %c1_27, %c0_28] : memref<1x18x4xbf16, #tpu.memory_space<vmem>>, vector<1x16x4xbf16>
    tpu.vector_store %arg12[%c0_26, %c1_27, %c0_28], %20 {strides = array<i32>} : memref<1x18x4xbf16, #tpu.memory_space<vmem>>, vector<1x16x4xbf16>,
    %c0_29 = arith.constant 0 : index
    %c0_30 = arith.constant 0 : index
    %c0_31 = arith.constant 0 : index
    %22 = vector.load %arg12[%c0_29, %c0_30, %c0_31] : memref<1x18x4xbf16, #tpu.memory_space<vmem>>, vector<1x18x4xbf16>
    %23 = vector.extract_strided_slice %22 {offsets = [0, 1, 0], sizes = [1, 16, 4], strides = [1, 1, 1]} : vector<1x18x4xbf16> to vector<1x16x4xbf16>
    %24 = vector.shape_cast %23 : vector<1x16x4xbf16> to vector<16x4xbf16>
    %c0_32 = arith.constant 0 : index
    %c0_33 = arith.constant 0 : index
    %25 = vector.load %arg6[%c0_32, %c0_33] : memref<4x8xbf16, #tpu.memory_space<vmem>>, vector<4x8xbf16>
    %cst_34 = arith.constant dense<0.000000e+00> : vector<16x8xf32>
    %26 = tpu.matmul %24, %25, %cst_34 {dimension_numbers = #tpu.dot_dimension_numbers<[1], [0], [0], [1], [0, 0, 1, 1], [], []>} : vector<16x4xbf16>, vector<4x8xbf16>, vector<16x8xf32> -> vector<16x8xf32>
    %27 = vector.shape_cast %26 : vector<16x8xf32> to vector<1x16x8xf32>
    %28 = vector.shape_cast %8 : vector<1x8xf32> to vector<1x1x8xf32>
    %29 = vector.broadcast %28 : vector<1x1x8xf32> to vector<1x16x8xf32>
    %30 = arith.addf %27, %29 : vector<1x16x8xf32>
    %cst_35 = arith.constant 0.000000e+00 : f32
    %31 = vector.broadcast %cst_35 : f32 to vector<16x8xf32>
    %32 = vector.extract_strided_slice %22 {offsets = [0, 0, 0], sizes = [1, 16, 4], strides = [1, 1, 1]} : vector<1x18x4xbf16> to vector<1x16x4xbf16>
    %33 = vector.shape_cast %32 : vector<1x16x4xbf16> to vector<16x4xbf16>
    %c0_36 = arith.constant 0 : index
    %c0_37 = arith.constant 0 : index
    %c0_38 = arith.constant 0 : index
    %34 = vector.load %arg3[%c0_36, %c0_37, %c0_38] : memref<3x4x8xbf16, #tpu.memory_space<vmem>>, vector<1x4x8xbf16>
    %35 = vector.shape_cast %34 : vector<1x4x8xbf16> to vector<4x8xbf16>
    %cst_39 = arith.constant dense<0.000000e+00> : vector<16x8xf32>
    %36 = tpu.matmul %33, %35, %cst_39 {dimension_numbers = #tpu.dot_dimension_numbers<[1], [0], [0], [1], [0, 0, 1, 1], [], []>} : vector<16x4xbf16>, vector<4x8xbf16>, vector<16x8xf32> -> vector<16x8xf32>
    %37 = arith.addf %31, %36 : vector<16x8xf32>
    %38 = vector.extract_strided_slice %22 {offsets = [0, 1, 0], sizes = [1, 16, 4], strides = [1, 1, 1]} : vector<1x18x4xbf16> to vector<1x16x4xbf16>
    %39 = vector.shape_cast %38 : vector<1x16x4xbf16> to vector<16x4xbf16>
    %c1_40 = arith.constant 1 : index
    %c0_41 = arith.constant 0 : index
    %c0_42 = arith.constant 0 : index
    %40 = vector.load %arg3[%c1_40, %c0_41, %c0_42] : memref<3x4x8xbf16, #tpu.memory_space<vmem>>, vector<1x4x8xbf16>
    %41 = vector.shape_cast %40 : vector<1x4x8xbf16> to vector<4x8xbf16>
    %cst_43 = arith.constant dense<0.000000e+00> : vector<16x8xf32>
    %42 = tpu.matmul %39, %41, %cst_43 {dimension_numbers = #tpu.dot_dimension_numbers<[1], [0], [0], [1], [0, 0, 1, 1], [], []>} : vector<16x4xbf16>, vector<4x8xbf16>, vector<16x8xf32> -> vector<16x8xf32>
    %43 = arith.addf %37, %42 : vector<16x8xf32>
    %44 = vector.extract_strided_slice %22 {offsets = [0, 2, 0], sizes = [1, 16, 4], strides = [1, 1, 1]} : vector<1x18x4xbf16> to vector<1x16x4xbf16>
    %45 = vector.shape_cast %44 : vector<1x16x4xbf16> to vector<16x4xbf16>
    %c2_44 = arith.constant 2 : index
    %c0_45 = arith.constant 0 : index
    %c0_46 = arith.constant 0 : index
    %46 = vector.load %arg3[%c2_44, %c0_45, %c0_46] : memref<3x4x8xbf16, #tpu.memory_space<vmem>>, vector<1x4x8xbf16>
    %47 = vector.shape_cast %46 : vector<1x4x8xbf16> to vector<4x8xbf16>
    %cst_47 = arith.constant dense<0.000000e+00> : vector<16x8xf32>
    %48 = tpu.matmul %45, %47, %cst_47 {dimension_numbers = #tpu.dot_dimension_numbers<[1], [0], [0], [1], [0, 0, 1, 1], [], []>} : vector<16x4xbf16>, vector<4x8xbf16>, vector<16x8xf32> -> vector<16x8xf32>
    %49 = arith.addf %43, %48 : vector<16x8xf32>
    %50 = vector.shape_cast %49 : vector<16x8xf32> to vector<1x16x8xf32>
    %51 = vector.shape_cast %2 : vector<1x8xf32> to vector<1x1x8xf32>
    %52 = vector.broadcast %51 : vector<1x1x8xf32> to vector<1x16x8xf32>
    %53 = arith.addf %50, %52 : vector<1x16x8xf32>
    %cst_48 = arith.constant dense<0.000000e+00> : vector<1x8xf32>
    %54 = vector.multi_reduction <add>, %53, %cst_48 [1] : vector<1x16x8xf32> to vector<1x8xf32>
    %cst_49 = arith.constant dense<0.000000e+00> : vector<1x8xf32>
    %55 = tpu.matmul %54, %1, %cst_49 {dimension_numbers = #tpu.dot_dimension_numbers<[1], [0], [0], [1], [0, 0, 1, 1], [], []>} : vector<1x8xf32>, vector<8x8xf32>, vector<1x8xf32> -> vector<1x8xf32>
    %56 = vector.shape_cast %55 : vector<1x8xf32> to vector<1x1x8xf32>
    %57 = vector.broadcast %56 : vector<1x1x8xf32> to vector<1x16x8xf32>
    %58 = arith.subf %53, %57 : vector<1x16x8xf32>
    %59 = arith.mulf %58, %58 : vector<1x16x8xf32>
    %cst_50 = arith.constant dense<0.000000e+00> : vector<1x8xf32>
    %60 = vector.multi_reduction <add>, %59, %cst_50 [1] : vector<1x16x8xf32> to vector<1x8xf32>
    %cst_51 = arith.constant dense<0.000000e+00> : vector<1x8xf32>
    %61 = tpu.matmul %60, %1, %cst_51 {dimension_numbers = #tpu.dot_dimension_numbers<[1], [0], [0], [1], [0, 0, 1, 1], [], []>} : vector<1x8xf32>, vector<8x8xf32>, vector<1x8xf32> -> vector<1x8xf32>
    %62 = vector.shape_cast %61 : vector<1x8xf32> to vector<1x1x8xf32>
    %cst_52 = arith.constant 9.99999974E-6 : f32
    %63 = vector.broadcast %cst_52 : f32 to vector<1x1x8xf32>
    %64 = arith.addf %62, %63 : vector<1x1x8xf32>
    %65 = math.rsqrt %64 : vector<1x1x8xf32>
    %66 = vector.broadcast %65 : vector<1x1x8xf32> to vector<1x16x8xf32>
    %67 = arith.mulf %58, %66 : vector<1x16x8xf32>
    %68 = vector.shape_cast %3 : vector<1x8xf32> to vector<1x1x8xf32>
    %69 = vector.broadcast %68 : vector<1x1x8xf32> to vector<1x16x8xf32>
    %70 = arith.mulf %67, %69 : vector<1x16x8xf32>
    %71 = vector.shape_cast %4 : vector<1x8xf32> to vector<1x1x8xf32>
    %72 = vector.broadcast %71 : vector<1x1x8xf32> to vector<1x16x8xf32>
    %73 = arith.addf %70, %72 : vector<1x16x8xf32>
    %cst_53 = arith.constant 1.000000e+00 : f32
    %74 = vector.broadcast %cst_53 : f32 to vector<1x1x8xf32>
    %75 = arith.addf %74, %10 : vector<1x1x8xf32>
    %76 = vector.broadcast %75 : vector<1x1x8xf32> to vector<1x16x8xf32>
    %77 = arith.mulf %73, %76 : vector<1x16x8xf32>
    %78 = vector.broadcast %11 : vector<1x1x8xf32> to vector<1x16x8xf32>
    %79 = arith.addf %77, %78 : vector<1x16x8xf32>
    %80 = arith.negf %79 : vector<1x16x8xf32>
    %81 = math.exp %80 : vector<1x16x8xf32>
    %cst_54 = arith.constant 1.000000e+00 : f32
    %82 = vector.broadcast %cst_54 : f32 to vector<1x16x8xf32>
    %83 = arith.addf %82, %81 : vector<1x16x8xf32>
    %84 = arith.divf %82, %83 : vector<1x16x8xf32>
    %85 = arith.mulf %79, %84 : vector<1x16x8xf32>
    %86 = arith.truncf %85 : vector<1x16x8xf32> to vector<1x16x8xbf16>
    %c0_55 = arith.constant 0 : index
    %c7 = arith.constant 7 : index
    %c0_56 = arith.constant 0 : index
    %87 = vector.load %arg13[%c0_55, %c7, %c0_56] : memref<1x30x8xbf16, #tpu.memory_space<vmem>>, vector<1x16x8xbf16>
    tpu.vector_store %arg13[%c0_55, %c7, %c0_56], %86 {strides = array<i32>} : memref<1x30x8xbf16, #tpu.memory_space<vmem>>, vector<1x16x8xbf16>,
    %c0_57 = arith.constant 0 : index
    %c0_58 = arith.constant 0 : index
    %c0_59 = arith.constant 0 : index
    %88 = vector.load %arg13[%c0_57, %c0_58, %c0_59] : memref<1x30x8xbf16, #tpu.memory_space<vmem>>, vector<1x30x8xbf16>
    %cst_60 = arith.constant 0.000000e+00 : f32
    %89 = vector.broadcast %cst_60 : f32 to vector<16x8xf32>
    %90 = vector.extract_strided_slice %88 {offsets = [0, 6, 0], sizes = [1, 16, 8], strides = [1, 1, 1]} : vector<1x30x8xbf16> to vector<1x16x8xbf16>
    %91 = vector.shape_cast %90 : vector<1x16x8xbf16> to vector<16x8xbf16>
    %c0_61 = arith.constant 0 : index
    %c0_62 = arith.constant 0 : index
    %c0_63 = arith.constant 0 : index
    %92 = vector.load %arg4[%c0_61, %c0_62, %c0_63] : memref<3x8x8xbf16, #tpu.memory_space<vmem>>, vector<1x8x8xbf16>
    %93 = vector.shape_cast %92 : vector<1x8x8xbf16> to vector<8x8xbf16>
    %cst_64 = arith.constant dense<0.000000e+00> : vector<16x8xf32>
    %94 = tpu.matmul %91, %93, %cst_64 {dimension_numbers = #tpu.dot_dimension_numbers<[1], [0], [0], [1], [0, 0, 1, 1], [], []>} : vector<16x8xbf16>, vector<8x8xbf16>, vector<16x8xf32> -> vector<16x8xf32>
    %95 = arith.addf %89, %94 : vector<16x8xf32>
    %96 = vector.extract_strided_slice %88 {offsets = [0, 7, 0], sizes = [1, 16, 8], strides = [1, 1, 1]} : vector<1x30x8xbf16> to vector<1x16x8xbf16>
    %97 = vector.shape_cast %96 : vector<1x16x8xbf16> to vector<16x8xbf16>
    %c1_65 = arith.constant 1 : index
    %c0_66 = arith.constant 0 : index
    %c0_67 = arith.constant 0 : index
    %98 = vector.load %arg4[%c1_65, %c0_66, %c0_67] : memref<3x8x8xbf16, #tpu.memory_space<vmem>>, vector<1x8x8xbf16>
    %99 = vector.shape_cast %98 : vector<1x8x8xbf16> to vector<8x8xbf16>
    %cst_68 = arith.constant dense<0.000000e+00> : vector<16x8xf32>
    %100 = tpu.matmul %97, %99, %cst_68 {dimension_numbers = #tpu.dot_dimension_numbers<[1], [0], [0], [1], [0, 0, 1, 1], [], []>} : vector<16x8xbf16>, vector<8x8xbf16>, vector<16x8xf32> -> vector<16x8xf32>
    %101 = arith.addf %95, %100 : vector<16x8xf32>
    %102 = vector.extract_strided_slice %88 {offsets = [0, 8, 0], sizes = [1, 16, 8], strides = [1, 1, 1]} : vector<1x30x8xbf16> to vector<1x16x8xbf16>
    %103 = vector.shape_cast %102 : vector<1x16x8xbf16> to vector<16x8xbf16>
    %c2_69 = arith.constant 2 : index
    %c0_70 = arith.constant 0 : index
    %c0_71 = arith.constant 0 : index
    %104 = vector.load %arg4[%c2_69, %c0_70, %c0_71] : memref<3x8x8xbf16, #tpu.memory_space<vmem>>, vector<1x8x8xbf16>
    %105 = vector.shape_cast %104 : vector<1x8x8xbf16> to vector<8x8xbf16>
    %cst_72 = arith.constant dense<0.000000e+00> : vector<16x8xf32>
    %106 = tpu.matmul %103, %105, %cst_72 {dimension_numbers = #tpu.dot_dimension_numbers<[1], [0], [0], [1], [0, 0, 1, 1], [], []>} : vector<16x8xbf16>, vector<8x8xbf16>, vector<16x8xf32> -> vector<16x8xf32>
    %107 = arith.addf %101, %106 : vector<16x8xf32>
    %108 = vector.shape_cast %107 : vector<16x8xf32> to vector<1x16x8xf32>
    %109 = vector.shape_cast %5 : vector<1x8xf32> to vector<1x1x8xf32>
    %110 = vector.broadcast %109 : vector<1x1x8xf32> to vector<1x16x8xf32>
    %111 = arith.addf %108, %110 : vector<1x16x8xf32>
    %cst_73 = arith.constant dense<0.000000e+00> : vector<1x8xf32>
    %112 = vector.multi_reduction <add>, %111, %cst_73 [1] : vector<1x16x8xf32> to vector<1x8xf32>
    %cst_74 = arith.constant dense<0.000000e+00> : vector<1x8xf32>
    %113 = tpu.matmul %112, %1, %cst_74 {dimension_numbers = #tpu.dot_dimension_numbers<[1], [0], [0], [1], [0, 0, 1, 1], [], []>} : vector<1x8xf32>, vector<8x8xf32>, vector<1x8xf32> -> vector<1x8xf32>
    %114 = vector.shape_cast %113 : vector<1x8xf32> to vector<1x1x8xf32>
    %115 = vector.broadcast %114 : vector<1x1x8xf32> to vector<1x16x8xf32>
    %116 = arith.subf %111, %115 : vector<1x16x8xf32>
    %117 = arith.mulf %116, %116 : vector<1x16x8xf32>
    %cst_75 = arith.constant dense<0.000000e+00> : vector<1x8xf32>
    %118 = vector.multi_reduction <add>, %117, %cst_75 [1] : vector<1x16x8xf32> to vector<1x8xf32>
    %cst_76 = arith.constant dense<0.000000e+00> : vector<1x8xf32>
    %119 = tpu.matmul %118, %1, %cst_76 {dimension_numbers = #tpu.dot_dimension_numbers<[1], [0], [0], [1], [0, 0, 1, 1], [], []>} : vector<1x8xf32>, vector<8x8xf32>, vector<1x8xf32> -> vector<1x8xf32>
    %120 = vector.shape_cast %119 : vector<1x8xf32> to vector<1x1x8xf32>
    %cst_77 = arith.constant 9.99999974E-6 : f32
    %121 = vector.broadcast %cst_77 : f32 to vector<1x1x8xf32>
    %122 = arith.addf %120, %121 : vector<1x1x8xf32>
    %123 = math.rsqrt %122 : vector<1x1x8xf32>
    %124 = vector.broadcast %123 : vector<1x1x8xf32> to vector<1x16x8xf32>
    %125 = arith.mulf %116, %124 : vector<1x16x8xf32>
    %126 = vector.shape_cast %6 : vector<1x8xf32> to vector<1x1x8xf32>
    %127 = vector.broadcast %126 : vector<1x1x8xf32> to vector<1x16x8xf32>
    %128 = arith.mulf %125, %127 : vector<1x16x8xf32>
    %129 = vector.shape_cast %7 : vector<1x8xf32> to vector<1x1x8xf32>
    %130 = vector.broadcast %129 : vector<1x1x8xf32> to vector<1x16x8xf32>
    %131 = arith.addf %128, %130 : vector<1x16x8xf32>
    %cst_78 = arith.constant 1.000000e+00 : f32
    %132 = vector.broadcast %cst_78 : f32 to vector<1x1x8xf32>
    %133 = arith.addf %132, %12 : vector<1x1x8xf32>
    %134 = vector.broadcast %133 : vector<1x1x8xf32> to vector<1x16x8xf32>
    %135 = arith.mulf %131, %134 : vector<1x16x8xf32>
    %136 = vector.broadcast %13 : vector<1x1x8xf32> to vector<1x16x8xf32>
    %137 = arith.addf %135, %136 : vector<1x16x8xf32>
    %138 = arith.negf %137 : vector<1x16x8xf32>
    %139 = math.exp %138 : vector<1x16x8xf32>
    %cst_79 = arith.constant 1.000000e+00 : f32
    %140 = vector.broadcast %cst_79 : f32 to vector<1x16x8xf32>
    %141 = arith.addf %140, %139 : vector<1x16x8xf32>
    %142 = arith.divf %140, %141 : vector<1x16x8xf32>
    %143 = arith.mulf %137, %142 : vector<1x16x8xf32>
    %144 = arith.truncf %143 : vector<1x16x8xf32> to vector<1x16x8xbf16>
    %c0_80 = arith.constant 0 : index
    %c7_81 = arith.constant 7 : index
    %c0_82 = arith.constant 0 : index
    %145 = vector.load %arg13[%c0_80, %c7_81, %c0_82] : memref<1x30x8xbf16, #tpu.memory_space<vmem>>, vector<1x16x8xbf16>
    tpu.vector_store %arg13[%c0_80, %c7_81, %c0_82], %144 {strides = array<i32>} : memref<1x30x8xbf16, #tpu.memory_space<vmem>>, vector<1x16x8xbf16>,
    %c0_83 = arith.constant 0 : index
    %c0_84 = arith.constant 0 : index
    %c0_85 = arith.constant 0 : index
    %146 = vector.load %arg13[%c0_83, %c0_84, %c0_85] : memref<1x30x8xbf16, #tpu.memory_space<vmem>>, vector<1x30x8xbf16>
    %cst_86 = arith.constant 0.000000e+00 : f32
    %147 = vector.broadcast %cst_86 : f32 to vector<16x24xf32>
    %148 = vector.extract_strided_slice %146 {offsets = [0, 0, 0], sizes = [1, 16, 8], strides = [1, 1, 1]} : vector<1x30x8xbf16> to vector<1x16x8xbf16>
    %149 = vector.shape_cast %148 : vector<1x16x8xbf16> to vector<16x8xbf16>
    %c0_87 = arith.constant 0 : index
    %c0_88 = arith.constant 0 : index
    %c0_89 = arith.constant 0 : index
    %150 = vector.load %arg5[%c0_87, %c0_88, %c0_89] : memref<15x8x24xbf16, #tpu.memory_space<vmem>>, vector<1x8x24xbf16>
    %151 = vector.shape_cast %150 : vector<1x8x24xbf16> to vector<8x24xbf16>
    %cst_90 = arith.constant dense<0.000000e+00> : vector<16x24xf32>
    %152 = tpu.matmul %149, %151, %cst_90 {dimension_numbers = #tpu.dot_dimension_numbers<[1], [0], [0], [1], [0, 0, 1, 1], [], []>} : vector<16x8xbf16>, vector<8x24xbf16>, vector<16x24xf32> -> vector<16x24xf32>
    %153 = arith.addf %147, %152 : vector<16x24xf32>
    %154 = vector.extract_strided_slice %146 {offsets = [0, 1, 0], sizes = [1, 16, 8], strides = [1, 1, 1]} : vector<1x30x8xbf16> to vector<1x16x8xbf16>
    %155 = vector.shape_cast %154 : vector<1x16x8xbf16> to vector<16x8xbf16>
    %c1_91 = arith.constant 1 : index
    %c0_92 = arith.constant 0 : index
    %c0_93 = arith.constant 0 : index
    %156 = vector.load %arg5[%c1_91, %c0_92, %c0_93] : memref<15x8x24xbf16, #tpu.memory_space<vmem>>, vector<1x8x24xbf16>
    %157 = vector.shape_cast %156 : vector<1x8x24xbf16> to vector<8x24xbf16>
    %cst_94 = arith.constant dense<0.000000e+00> : vector<16x24xf32>
    %158 = tpu.matmul %155, %157, %cst_94 {dimension_numbers = #tpu.dot_dimension_numbers<[1], [0], [0], [1], [0, 0, 1, 1], [], []>} : vector<16x8xbf16>, vector<8x24xbf16>, vector<16x24xf32> -> vector<16x24xf32>
    %159 = arith.addf %153, %158 : vector<16x24xf32>
    %160 = vector.extract_strided_slice %146 {offsets = [0, 2, 0], sizes = [1, 16, 8], strides = [1, 1, 1]} : vector<1x30x8xbf16> to vector<1x16x8xbf16>
    %161 = vector.shape_cast %160 : vector<1x16x8xbf16> to vector<16x8xbf16>
    %c2_95 = arith.constant 2 : index
    %c0_96 = arith.constant 0 : index
    %c0_97 = arith.constant 0 : index
    %162 = vector.load %arg5[%c2_95, %c0_96, %c0_97] : memref<15x8x24xbf16, #tpu.memory_space<vmem>>, vector<1x8x24xbf16>
    %163 = vector.shape_cast %162 : vector<1x8x24xbf16> to vector<8x24xbf16>
    %cst_98 = arith.constant dense<0.000000e+00> : vector<16x24xf32>
    %164 = tpu.matmul %161, %163, %cst_98 {dimension_numbers = #tpu.dot_dimension_numbers<[1], [0], [0], [1], [0, 0, 1, 1], [], []>} : vector<16x8xbf16>, vector<8x24xbf16>, vector<16x24xf32> -> vector<16x24xf32>
    %165 = arith.addf %159, %164 : vector<16x24xf32>
    %166 = vector.extract_strided_slice %146 {offsets = [0, 3, 0], sizes = [1, 16, 8], strides = [1, 1, 1]} : vector<1x30x8xbf16> to vector<1x16x8xbf16>
    %167 = vector.shape_cast %166 : vector<1x16x8xbf16> to vector<16x8xbf16>
    %c3_99 = arith.constant 3 : index
    %c0_100 = arith.constant 0 : index
    %c0_101 = arith.constant 0 : index
    %168 = vector.load %arg5[%c3_99, %c0_100, %c0_101] : memref<15x8x24xbf16, #tpu.memory_space<vmem>>, vector<1x8x24xbf16>
    %169 = vector.shape_cast %168 : vector<1x8x24xbf16> to vector<8x24xbf16>
    %cst_102 = arith.constant dense<0.000000e+00> : vector<16x24xf32>
    %170 = tpu.matmul %167, %169, %cst_102 {dimension_numbers = #tpu.dot_dimension_numbers<[1], [0], [0], [1], [0, 0, 1, 1], [], []>} : vector<16x8xbf16>, vector<8x24xbf16>, vector<16x24xf32> -> vector<16x24xf32>
    %171 = arith.addf %165, %170 : vector<16x24xf32>
    %172 = vector.extract_strided_slice %146 {offsets = [0, 4, 0], sizes = [1, 16, 8], strides = [1, 1, 1]} : vector<1x30x8xbf16> to vector<1x16x8xbf16>
    %173 = vector.shape_cast %172 : vector<1x16x8xbf16> to vector<16x8xbf16>
    %c4 = arith.constant 4 : index
    %c0_103 = arith.constant 0 : index
    %c0_104 = arith.constant 0 : index
    %174 = vector.load %arg5[%c4, %c0_103, %c0_104] : memref<15x8x24xbf16, #tpu.memory_space<vmem>>, vector<1x8x24xbf16>
    %175 = vector.shape_cast %174 : vector<1x8x24xbf16> to vector<8x24xbf16>
    %cst_105 = arith.constant dense<0.000000e+00> : vector<16x24xf32>
    %176 = tpu.matmul %173, %175, %cst_105 {dimension_numbers = #tpu.dot_dimension_numbers<[1], [0], [0], [1], [0, 0, 1, 1], [], []>} : vector<16x8xbf16>, vector<8x24xbf16>, vector<16x24xf32> -> vector<16x24xf32>
    %177 = arith.addf %171, %176 : vector<16x24xf32>
    %178 = vector.extract_strided_slice %146 {offsets = [0, 5, 0], sizes = [1, 16, 8], strides = [1, 1, 1]} : vector<1x30x8xbf16> to vector<1x16x8xbf16>
    %179 = vector.shape_cast %178 : vector<1x16x8xbf16> to vector<16x8xbf16>
    %c5 = arith.constant 5 : index
    %c0_106 = arith.constant 0 : index
    %c0_107 = arith.constant 0 : index
    %180 = vector.load %arg5[%c5, %c0_106, %c0_107] : memref<15x8x24xbf16, #tpu.memory_space<vmem>>, vector<1x8x24xbf16>
    %181 = vector.shape_cast %180 : vector<1x8x24xbf16> to vector<8x24xbf16>
    %cst_108 = arith.constant dense<0.000000e+00> : vector<16x24xf32>
    %182 = tpu.matmul %179, %181, %cst_108 {dimension_numbers = #tpu.dot_dimension_numbers<[1], [0], [0], [1], [0, 0, 1, 1], [], []>} : vector<16x8xbf16>, vector<8x24xbf16>, vector<16x24xf32> -> vector<16x24xf32>
    %183 = arith.addf %177, %182 : vector<16x24xf32>
    %184 = vector.extract_strided_slice %146 {offsets = [0, 6, 0], sizes = [1, 16, 8], strides = [1, 1, 1]} : vector<1x30x8xbf16> to vector<1x16x8xbf16>
    %185 = vector.shape_cast %184 : vector<1x16x8xbf16> to vector<16x8xbf16>
    %c6 = arith.constant 6 : index
    %c0_109 = arith.constant 0 : index
    %c0_110 = arith.constant 0 : index
    %186 = vector.load %arg5[%c6, %c0_109, %c0_110] : memref<15x8x24xbf16, #tpu.memory_space<vmem>>, vector<1x8x24xbf16>
    %187 = vector.shape_cast %186 : vector<1x8x24xbf16> to vector<8x24xbf16>
    %cst_111 = arith.constant dense<0.000000e+00> : vector<16x24xf32>
    %188 = tpu.matmul %185, %187, %cst_111 {dimension_numbers = #tpu.dot_dimension_numbers<[1], [0], [0], [1], [0, 0, 1, 1], [], []>} : vector<16x8xbf16>, vector<8x24xbf16>, vector<16x24xf32> -> vector<16x24xf32>
    %189 = arith.addf %183, %188 : vector<16x24xf32>
    %190 = vector.extract_strided_slice %146 {offsets = [0, 7, 0], sizes = [1, 16, 8], strides = [1, 1, 1]} : vector<1x30x8xbf16> to vector<1x16x8xbf16>
    %191 = vector.shape_cast %190 : vector<1x16x8xbf16> to vector<16x8xbf16>
    %c7_112 = arith.constant 7 : index
    %c0_113 = arith.constant 0 : index
    %c0_114 = arith.constant 0 : index
    %192 = vector.load %arg5[%c7_112, %c0_113, %c0_114] : memref<15x8x24xbf16, #tpu.memory_space<vmem>>, vector<1x8x24xbf16>
    %193 = vector.shape_cast %192 : vector<1x8x24xbf16> to vector<8x24xbf16>
    %cst_115 = arith.constant dense<0.000000e+00> : vector<16x24xf32>
    %194 = tpu.matmul %191, %193, %cst_115 {dimension_numbers = #tpu.dot_dimension_numbers<[1], [0], [0], [1], [0, 0, 1, 1], [], []>} : vector<16x8xbf16>, vector<8x24xbf16>, vector<16x24xf32> -> vector<16x24xf32>
    %195 = arith.addf %189, %194 : vector<16x24xf32>
    %196 = vector.extract_strided_slice %146 {offsets = [0, 8, 0], sizes = [1, 16, 8], strides = [1, 1, 1]} : vector<1x30x8xbf16> to vector<1x16x8xbf16>
    %197 = vector.shape_cast %196 : vector<1x16x8xbf16> to vector<16x8xbf16>
    %c8 = arith.constant 8 : index
    %c0_116 = arith.constant 0 : index
    %c0_117 = arith.constant 0 : index
    %198 = vector.load %arg5[%c8, %c0_116, %c0_117] : memref<15x8x24xbf16, #tpu.memory_space<vmem>>, vector<1x8x24xbf16>
    %199 = vector.shape_cast %198 : vector<1x8x24xbf16> to vector<8x24xbf16>
    %cst_118 = arith.constant dense<0.000000e+00> : vector<16x24xf32>
    %200 = tpu.matmul %197, %199, %cst_118 {dimension_numbers = #tpu.dot_dimension_numbers<[1], [0], [0], [1], [0, 0, 1, 1], [], []>} : vector<16x8xbf16>, vector<8x24xbf16>, vector<16x24xf32> -> vector<16x24xf32>
    %201 = arith.addf %195, %200 : vector<16x24xf32>
    %202 = vector.extract_strided_slice %146 {offsets = [0, 9, 0], sizes = [1, 16, 8], strides = [1, 1, 1]} : vector<1x30x8xbf16> to vector<1x16x8xbf16>
    %203 = vector.shape_cast %202 : vector<1x16x8xbf16> to vector<16x8xbf16>
    %c9 = arith.constant 9 : index
    %c0_119 = arith.constant 0 : index
    %c0_120 = arith.constant 0 : index
    %204 = vector.load %arg5[%c9, %c0_119, %c0_120] : memref<15x8x24xbf16, #tpu.memory_space<vmem>>, vector<1x8x24xbf16>
    %205 = vector.shape_cast %204 : vector<1x8x24xbf16> to vector<8x24xbf16>
    %cst_121 = arith.constant dense<0.000000e+00> : vector<16x24xf32>
    %206 = tpu.matmul %203, %205, %cst_121 {dimension_numbers = #tpu.dot_dimension_numbers<[1], [0], [0], [1], [0, 0, 1, 1], [], []>} : vector<16x8xbf16>, vector<8x24xbf16>, vector<16x24xf32> -> vector<16x24xf32>
    %207 = arith.addf %201, %206 : vector<16x24xf32>
    %208 = vector.extract_strided_slice %146 {offsets = [0, 10, 0], sizes = [1, 16, 8], strides = [1, 1, 1]} : vector<1x30x8xbf16> to vector<1x16x8xbf16>
    %209 = vector.shape_cast %208 : vector<1x16x8xbf16> to vector<16x8xbf16>
    %c10 = arith.constant 10 : index
    %c0_122 = arith.constant 0 : index
    %c0_123 = arith.constant 0 : index
    %210 = vector.load %arg5[%c10, %c0_122, %c0_123] : memref<15x8x24xbf16, #tpu.memory_space<vmem>>, vector<1x8x24xbf16>
    %211 = vector.shape_cast %210 : vector<1x8x24xbf16> to vector<8x24xbf16>
    %cst_124 = arith.constant dense<0.000000e+00> : vector<16x24xf32>
    %212 = tpu.matmul %209, %211, %cst_124 {dimension_numbers = #tpu.dot_dimension_numbers<[1], [0], [0], [1], [0, 0, 1, 1], [], []>} : vector<16x8xbf16>, vector<8x24xbf16>, vector<16x24xf32> -> vector<16x24xf32>
    %213 = arith.addf %207, %212 : vector<16x24xf32>
    %214 = vector.extract_strided_slice %146 {offsets = [0, 11, 0], sizes = [1, 16, 8], strides = [1, 1, 1]} : vector<1x30x8xbf16> to vector<1x16x8xbf16>
    %215 = vector.shape_cast %214 : vector<1x16x8xbf16> to vector<16x8xbf16>
    %c11 = arith.constant 11 : index
    %c0_125 = arith.constant 0 : index
    %c0_126 = arith.constant 0 : index
    %216 = vector.load %arg5[%c11, %c0_125, %c0_126] : memref<15x8x24xbf16, #tpu.memory_space<vmem>>, vector<1x8x24xbf16>
    %217 = vector.shape_cast %216 : vector<1x8x24xbf16> to vector<8x24xbf16>
    %cst_127 = arith.constant dense<0.000000e+00> : vector<16x24xf32>
    %218 = tpu.matmul %215, %217, %cst_127 {dimension_numbers = #tpu.dot_dimension_numbers<[1], [0], [0], [1], [0, 0, 1, 1], [], []>} : vector<16x8xbf16>, vector<8x24xbf16>, vector<16x24xf32> -> vector<16x24xf32>
    %219 = arith.addf %213, %218 : vector<16x24xf32>
    %220 = vector.extract_strided_slice %146 {offsets = [0, 12, 0], sizes = [1, 16, 8], strides = [1, 1, 1]} : vector<1x30x8xbf16> to vector<1x16x8xbf16>
    %221 = vector.shape_cast %220 : vector<1x16x8xbf16> to vector<16x8xbf16>
    %c12 = arith.constant 12 : index
    %c0_128 = arith.constant 0 : index
    %c0_129 = arith.constant 0 : index
    %222 = vector.load %arg5[%c12, %c0_128, %c0_129] : memref<15x8x24xbf16, #tpu.memory_space<vmem>>, vector<1x8x24xbf16>
    %223 = vector.shape_cast %222 : vector<1x8x24xbf16> to vector<8x24xbf16>
    %cst_130 = arith.constant dense<0.000000e+00> : vector<16x24xf32>
    %224 = tpu.matmul %221, %223, %cst_130 {dimension_numbers = #tpu.dot_dimension_numbers<[1], [0], [0], [1], [0, 0, 1, 1], [], []>} : vector<16x8xbf16>, vector<8x24xbf16>, vector<16x24xf32> -> vector<16x24xf32>
    %225 = arith.addf %219, %224 : vector<16x24xf32>
    %226 = vector.extract_strided_slice %146 {offsets = [0, 13, 0], sizes = [1, 16, 8], strides = [1, 1, 1]} : vector<1x30x8xbf16> to vector<1x16x8xbf16>
    %227 = vector.shape_cast %226 : vector<1x16x8xbf16> to vector<16x8xbf16>
    %c13 = arith.constant 13 : index
    %c0_131 = arith.constant 0 : index
    %c0_132 = arith.constant 0 : index
    %228 = vector.load %arg5[%c13, %c0_131, %c0_132] : memref<15x8x24xbf16, #tpu.memory_space<vmem>>, vector<1x8x24xbf16>
    %229 = vector.shape_cast %228 : vector<1x8x24xbf16> to vector<8x24xbf16>
    %cst_133 = arith.constant dense<0.000000e+00> : vector<16x24xf32>
    %230 = tpu.matmul %227, %229, %cst_133 {dimension_numbers = #tpu.dot_dimension_numbers<[1], [0], [0], [1], [0, 0, 1, 1], [], []>} : vector<16x8xbf16>, vector<8x24xbf16>, vector<16x24xf32> -> vector<16x24xf32>
    %231 = arith.addf %225, %230 : vector<16x24xf32>
    %232 = vector.extract_strided_slice %146 {offsets = [0, 14, 0], sizes = [1, 16, 8], strides = [1, 1, 1]} : vector<1x30x8xbf16> to vector<1x16x8xbf16>
    %233 = vector.shape_cast %232 : vector<1x16x8xbf16> to vector<16x8xbf16>
    %c14 = arith.constant 14 : index
    %c0_134 = arith.constant 0 : index
    %c0_135 = arith.constant 0 : index
    %234 = vector.load %arg5[%c14, %c0_134, %c0_135] : memref<15x8x24xbf16, #tpu.memory_space<vmem>>, vector<1x8x24xbf16>
    %235 = vector.shape_cast %234 : vector<1x8x24xbf16> to vector<8x24xbf16>
    %cst_136 = arith.constant dense<0.000000e+00> : vector<16x24xf32>
    %236 = tpu.matmul %233, %235, %cst_136 {dimension_numbers = #tpu.dot_dimension_numbers<[1], [0], [0], [1], [0, 0, 1, 1], [], []>} : vector<16x8xbf16>, vector<8x24xbf16>, vector<16x24xf32> -> vector<16x24xf32>
    %237 = arith.addf %231, %236 : vector<16x24xf32>
    %c0_137 = arith.constant 0 : index
    %c0_138 = arith.constant 0 : index
    %238 = vector.load %arg9[%c0_137, %c0_138] : memref<1x24xf32, #tpu.memory_space<vmem>>, vector<1x24xf32>
    %239 = vector.broadcast %238 : vector<1x24xf32> to vector<16x24xf32>
    %240 = arith.addf %237, %239 : vector<16x24xf32>
    %241 = tpu.iota {dimensions = array<i32: 1>} : vector<16x24xi32>
    %c8_i32 = arith.constant 8 : i32
    %242 = vector.broadcast %c8_i32 : i32 to vector<16x24xi32>
    %243 = arith.cmpi sge, %241, %242 : vector<16x24xi32>
    %c16_i32 = arith.constant 16 : i32
    %244 = vector.broadcast %c16_i32 : i32 to vector<16x24xi32>
    %245 = arith.cmpi slt, %241, %244 : vector<16x24xi32>
    %246 = arith.andi %243, %245 : vector<16x24xi1>
    %cst_139 = arith.constant 2.000000e+00 : f32
    %247 = vector.broadcast %cst_139 : f32 to vector<16x24xf32>
    %248 = arith.mulf %247, %240 : vector<16x24xf32>
    %249 = arith.select %246, %240, %248 : vector<16x24xi1>, vector<16x24xf32>
    %250 = arith.negf %249 : vector<16x24xf32>
    %251 = math.exp %250 : vector<16x24xf32>
    %cst_140 = arith.constant 1.000000e+00 : f32
    %252 = vector.broadcast %cst_140 : f32 to vector<16x24xf32>
    %253 = arith.addf %252, %251 : vector<16x24xf32>
    %254 = arith.divf %252, %253 : vector<16x24xf32>
    %cst_141 = arith.constant 2.000000e+00 : f32
    %255 = vector.broadcast %cst_141 : f32 to vector<16x24xf32>
    %256 = arith.mulf %255, %254 : vector<16x24xf32>
    %cst_142 = arith.constant 1.000000e+00 : f32
    %257 = vector.broadcast %cst_142 : f32 to vector<16x24xf32>
    %258 = arith.subf %256, %257 : vector<16x24xf32>
    %259 = arith.select %246, %254, %258 : vector<16x24xi1>, vector<16x24xf32>
    %260 = arith.truncf %259 : vector<16x24xf32> to vector<16x24xbf16>
    %c0_143 = arith.constant 0 : index
    %c0_144 = arith.constant 0 : index
    %261 = vector.load %arg7[%c0_143, %c0_144] : memref<24x8xbf16, #tpu.memory_space<vmem>>, vector<24x8xbf16>
    %cst_145 = arith.constant dense<0.000000e+00> : vector<16x8xf32>
    %262 = tpu.matmul %260, %261, %cst_145 {dimension_numbers = #tpu.dot_dimension_numbers<[1], [0], [0], [1], [0, 0, 1, 1], [], []>} : vector<16x24xbf16>, vector<24x8xbf16>, vector<16x8xf32> -> vector<16x8xf32>
    %263 = vector.shape_cast %262 : vector<16x8xf32> to vector<1x16x8xf32>
    %264 = vector.shape_cast %9 : vector<1x8xf32> to vector<1x1x8xf32>
    %265 = vector.broadcast %264 : vector<1x1x8xf32> to vector<1x16x8xf32>
    %266 = arith.addf %263, %265 : vector<1x16x8xf32>
    %267 = arith.addf %266, %30 : vector<1x16x8xf32>
    %268 = arith.truncf %267 : vector<1x16x8xf32> to vector<1x16x8xbf16>
    %c0_146 = arith.constant 0 : index
    %c0_147 = arith.constant 0 : index
    %c0_148 = arith.constant 0 : index
    %269 = vector.load %arg11[%c0_146, %c0_147, %c0_148] : memref<1x16x8xbf16, #tpu.memory_space<vmem>>, vector<1x16x8xbf16>
    tpu.vector_store %arg11[%c0_146, %c0_147, %c0_148], %268 {strides = array<i32>} : memref<1x16x8xbf16, #tpu.memory_space<vmem>>, vector<1x16x8xbf16>,
    return
  }
  func.func @transform_0(%arg0: i32) -> (i32, i32, i32) {
    %c0_i32 = arith.constant 0 : i32
    %c0_i32_0 = arith.constant 0 : i32
    %c0_i32_1 = arith.constant 0 : i32
    return %arg0, %c0_i32, %c0_i32_0 : i32, i32, i32
  }
  func.func @transform_1(%arg0: i32) -> (i32, i32, i32) {
    %c0_i32 = arith.constant 0 : i32
    %c0_i32_0 = arith.constant 0 : i32
    %c0_i32_1 = arith.constant 0 : i32
    return %arg0, %c0_i32, %c0_i32_0 : i32, i32, i32
  }
  func.func @transform_2(%arg0: i32) -> (i32, i32, i32) {
    %c0_i32 = arith.constant 0 : i32
    %c0_i32_0 = arith.constant 0 : i32
    %c0_i32_1 = arith.constant 0 : i32
    %c0_i32_2 = arith.constant 0 : i32
    return %c0_i32, %c0_i32_0, %c0_i32_1 : i32, i32, i32
  }
  func.func @transform_3(%arg0: i32) -> (i32, i32, i32) {
    %c0_i32 = arith.constant 0 : i32
    %c0_i32_0 = arith.constant 0 : i32
    %c0_i32_1 = arith.constant 0 : i32
    %c0_i32_2 = arith.constant 0 : i32
    return %c0_i32, %c0_i32_0, %c0_i32_1 : i32, i32, i32
  }
  func.func @transform_4(%arg0: i32) -> (i32, i32, i32) {
    %c0_i32 = arith.constant 0 : i32
    %c0_i32_0 = arith.constant 0 : i32
    %c0_i32_1 = arith.constant 0 : i32
    %c0_i32_2 = arith.constant 0 : i32
    return %c0_i32, %c0_i32_0, %c0_i32_1 : i32, i32, i32
  }
  func.func @transform_5(%arg0: i32) -> (i32, i32) {
    %c0_i32 = arith.constant 0 : i32
    %c0_i32_0 = arith.constant 0 : i32
    %c0_i32_1 = arith.constant 0 : i32
    return %c0_i32, %c0_i32_0 : i32, i32
  }
  func.func @transform_6(%arg0: i32) -> (i32, i32) {
    %c0_i32 = arith.constant 0 : i32
    %c0_i32_0 = arith.constant 0 : i32
    %c0_i32_1 = arith.constant 0 : i32
    return %c0_i32, %c0_i32_0 : i32, i32
  }
  func.func @transform_7(%arg0: i32) -> (i32, i32) {
    %c0_i32 = arith.constant 0 : i32
    %c0_i32_0 = arith.constant 0 : i32
    %c0_i32_1 = arith.constant 0 : i32
    return %c0_i32, %c0_i32_0 : i32, i32
  }
  func.func @transform_8(%arg0: i32) -> (i32, i32) {
    %c0_i32 = arith.constant 0 : i32
    %c0_i32_0 = arith.constant 0 : i32
    %c0_i32_1 = arith.constant 0 : i32
    return %c0_i32, %c0_i32_0 : i32, i32
  }
  func.func @transform_9(%arg0: i32) -> (i32, i32) {
    %c0_i32 = arith.constant 0 : i32
    %c0_i32_0 = arith.constant 0 : i32
    %c0_i32_1 = arith.constant 0 : i32
    return %c0_i32, %c0_i32_0 : i32, i32
  }
  func.func @transform_10(%arg0: i32) -> (i32, i32, i32) {
    %c0_i32 = arith.constant 0 : i32
    %c0_i32_0 = arith.constant 0 : i32
    %c0_i32_1 = arith.constant 0 : i32
    return %arg0, %c0_i32, %c0_i32_0 : i32, i32, i32
  }
}

</mosaic_0001>

<bundles_post_ra>
// kernel: tpu_custom_call.1
= control target key start
LH: loop header
LB: loop body
LE: loop exit
PB: predicated region body
PF: predicated region fallthrough
CT: control target
= control target key end

     0   :  { %15 = vsyncpa [#allocation5], 0  ;;  %s3382_s0 = inlined_call_operand.vmem [shape: bf16[2,16,4], index: 0, kind: input, shape index: {}]   ;;  %s3383_s1 = inlined_call_operand.vmem [shape: f32[2,4,8], index: 1, kind: input, shape index: {}]   ;;  %s3384_s2 = inlined_call_operand.hbm [shape: bf16[3,4,8], index: 2, kind: input, shape index: {}]   ;;  %s3385_s3 = inlined_call_operand.vmem [shape: bf16[3,8,8], index: 3, kind: input, shape index: {}]   ;;  %s3386_s4 = inlined_call_operand.hbm [shape: bf16[15,8,24], index: 4, kind: input, shape index: {}]   ;;  %s3387_s5 = inlined_call_operand.vmem [shape: bf16[4,8], index: 5, kind: input, shape index: {}]   ;;  %s3388_s6 = inlined_call_operand.vmem [shape: bf16[24,8], index: 6, kind: input, shape index: {}]   ;;  %s3389_s7 = inlined_call_operand.vmem [shape: f32[8,8], index: 7, kind: input, shape index: {}]   ;;  %s3390_s8 = inlined_call_operand.vmem [shape: f32[1,24], index: 8, kind: input, shape index: {}]   ;;  %s3391_s9 = inlined_call_operand.vmem [shape: f32[8,8], index: 9, kind: input, shape index: {}]   ;;  %s3392_s10 = inlined_call_operand.vmem [shape: bf16[2,16,8], index: 10, kind: output, shape index: {}]  }
   0x1   :  { %16 = vsyncpa [#allocation7], 0  ;;  %s2974_s13 = smov 0  }
   0x2 LB: > { %s2910_s14 = smov [#allocation4]   ;;  %s2980_s16 = sadd.s32 4294967295, %s2908_s13   ;;  %s2908_s13 = sphi %s2974_s13, %s22_s13  }
   0x3   : > { %s285_s15 = sshll.u32 %s2910_s14, 4  ;;  %p2472_p0 = scmp.ge.s32.totalorder %s2908_s13, 1  ;;  %s286_s15 = int_to_ptr.vmem [resolvable:$true] %s285_s15 }
   0x4   : > { %p273_p1 = scmp.lt.s32.totalorder %s2908_s13, 3  ;;  %p2781_p3 = scmp.eq.s32.totalorder %s2980_s16, 0 }
   0x5   : > { %s2911_s18 = smov [#allocation6]   ;;  %s2853_s21 = scalar_lea.vmem %s286_s15, 96 }
   0x6   : > { %p2984_p2 = pnand %p2472_p0, %p273_p1  ;;  %s301_s19 = sshll.u32 %s2911_s18, 4  ;;  %s302_s19 = int_to_ptr.vmem [resolvable:$true] %s301_s19 }
   0x7   : > { %p2854_p7 = scmp.ne.s32.totalorder %s286_s15, %s2853_s21  ;;  %p2861_p10 = scmp.lt.s32.totalorder %s286_s15, %s286_s15 }
   0x8   : > { %p2774_p4 = pneg %p2984_p2  ;;  %p2862_p11 = scmp.lt.s32.totalorder %s2853_s21, %s2853_s21 }
   0xa   : > { %p2993_p5 = pnand %p2781_p3, %p2774_p4  ;;  %p2863_p12 = por %p2862_p11, %p2861_p10 }
   0xc   : > { %p2844_p6 = pneg %p2993_p5 }
   0xe   : > { %p2856_p8 = pnand %p2854_p7, %p2844_p6 }
  0x10   : > { %p2857_p9 = pneg %p2856_p8 }
  0x12   : > { %p2864_p13 = pnand %p2863_p12, %p2857_p9 }
  0x14   : > { %2867 = shalt.err (!%p2864_p13)
}
  0x15   : > { %s2912_s22 = smov 32   ;;  %s2913_s23 = smov 2  }
  0x16   : > { %2777 = dma.hbm_to_vmem [thread:$0]  (!%p2993_p5), %s3384_s2, 96, %s286_s15, [#allocation5], %s2912_s22, %s2912_s22, %s2913_s23  }
  0x17   : > { %s2879_s26 = scalar_lea.vmem %s302_s19, 960  ;;  %p2887_p7 = scmp.lt.s32.totalorder %s302_s19, %s302_s19 }
  0x18   : > { %p2880_p0 = scmp.ne.s32.totalorder %s302_s19, %s2879_s26  ;;  %p2888_p8 = scmp.lt.s32.totalorder %s2879_s26, %s2879_s26 }
  0x1a   : > { %p2882_p1 = pnand %p2880_p0, %p2844_p6  ;;  %p2889_p10 = por %p2888_p8, %p2887_p7 }
  0x1c   : > { %p2883_p4 = pneg %p2882_p1 }
  0x1e   : > { %p2890_p9 = pnand %p2889_p10, %p2883_p4 }
  0x20   : > { %2893 = shalt.err (!%p2890_p9)
}
  0x21   : > { %s2914_s27 = smov 64   ;;  %s2915_s28 = smov 4  }
  0x22   : > { %2780 = dma.hbm_to_vmem [thread:$0]  (!%p2993_p5), %s3386_s4, 960, %s302_s19, [#allocation7], %s2914_s27, %s2914_s27, %s2915_s28  }
  0x23   : > { %347 = sbr.rel (%p2984_p2) target bundleno = 2020 (0x7e4), region = 60 }
  0x28   : > { %2899 = dma.done.wait (%p2781_p3), [#allocation5], 96  }
  0x29   : > { %2901 = vsyncadd (%p2781_p3), [#allocation5], 4294967200 }
  0x2a   : > { %2903 = dma.done.wait (%p2781_p3), [#allocation7], 960  }
  0x2b   : > { %2905 = vsyncadd (%p2781_p3), [#allocation7], 4294966336  ;;  %p393_p6 = scmp.lt.s32.totalorder %s2980_s16, 1  ;;  %v2916_v0 = vmov 0.0   ;;  %vm2917_vm0 = vmmov 0   ;;  %vm414_vm1 = vcmask 24576   ;;  %v547_v47 = vlaneseq }
  0x2c   : > { %2606 = vmatprep.subr.bf16.mxu0 %v2916_v0  ;;  %2612 = vmatprep.subr.bf16.mxu1 %v2916_v0  ;;  %vm415_vm2 = vsmask.f32 256  ;;  %vm420_vm3 = vsmask.f32 7938  ;;  %vm502_vm4 = vcmask 1041408   ;;  %vm463_vm8 = vcmask 27648  }
  0x2d   : > { %2608 = vmatprep.mubr.msk.bf16.mxu0 %vm2917_vm0, %v2916_v0  ;;  %2614 = vmatprep.mubr.msk.bf16.mxu1 %vm2917_vm0, %v2916_v0  ;;  %s3408_s16 = smov (!%p393_p6, %s2980_s16), 1  ;;  %vm3037_vm5 = vmand %vm414_vm1, %vm415_vm2  ;;  %vm441_vm7 = vsmask.f32 4368  ;;  %v476_v3 = vld [vmem:[%s3387_s5] sm:$0x3]  ;;  %vm498_vm12 = vcmask 31744  }
  0x2e   : > { %s2543_s11 = sshll.u32 %s3408_s16, 3  ;;  %vm3047_vm6 = vmand %vm414_vm1, %vm420_vm3  ;;  %v555_v4 = vld [vmem:[#allocation4 + $0x2] sm:$0x3]  ;;  %v417_v5 = vld [vmem:[#allocation2] sm:$0x1]  ;;  %v504_v6 = vsel %vm502_vm4, %v476_v3, 0 }
  0x2f   : > { %s397_s15 = scalar_lea.vmem %s3382_s0, %s2543_s11  ;;  %v557_v7 = vsel %vm502_vm4, %v555_v4, 0  ;;  %v418_v8 = vsel %vm3037_vm5, 0, %v417_v5  ;;  %v422_v9 = vld [vmem:[#allocation2 + $0x8] sm:$0x1]  ;;  %2607 = vmatpush3.bf16.msra.mxu0 %v504_v6  ;;  %vm442_vm9 = vmor %vm415_vm2, %vm441_vm7  ;;  %v553_v34 = vld [vmem:[#allocation4] sm:$0x3]  ;;  %s406_s26 = scalar_lea.vmem %s3392_s10, %s2543_s11 }
  0x30   : > { %2613 = vmatpush3.bf16.msra.mxu1 %v557_v7  ;;  %419 = vst [vmem:[#allocation2] sm:$0x1] %v418_v8  ;;  %v423_v10 = vsel %vm3047_vm6, 0, %v422_v9  ;;  %v439_v11 = vld [vmem:[%s397_s15] sm:$0xf]  ;;  %2618 = vmatprep.subr.bf16.mxu0 %v2916_v0  ;;  %vm464_vm10 = vmand %vm463_vm8, %vm420_vm3  ;;  %v603_v38 = vsel %vm502_vm4, %v553_v34, 0 }
  0x31   : > { %v440_v12 = vld [vmem:[%s397_s15 + $0x4] sm:$0xf]  ;;  %424 = vst [vmem:[#allocation2 + $0x8] sm:$0x1] %v423_v10  ;;  %v444_v13 = vshrl.u32 %v439_v11, 16  ;;  %v447_v14 = vshll.u32 %v439_v11, 16  ;;  %2624 = vmatprep.subr.bf16.mxu1 %v2916_v0 }
  0x32   : > { %v452_v15 = vshrl.u32 %v440_v12, 16  ;;  %v455_v16 = vshll.u32 %v440_v12, 16  ;;  %v647_v35 = vld [vmem:[#allocation4 + $0x4] sm:$0x3]  ;;  %vm485_vm11 = vsmask.f32 7424 }
  0x33   : > { %v446_v17 = vrot.slane %v444_v13, 7  ;;  %v656_v39 = vsel %vm502_vm4, %v647_v35, 0  ;;  %vm648_vm13 = vcmask 1046528   ;;  %v3088_v44 = vld [vmem:[%s3391_s9] sm:$0xff]  ;;  %v3099_v52 = vshrl.u32 %v547_v47, 7  ;;  %s2481_s27 = sshll.u32 %s3408_s16, 2 }
  0x34   : > { %v454_v18 = vrot.slane %v452_v15, 7  ;;  %v3107_v59 = vld [vmem:[%s3389_s7] sm:$0xff]  ;;  %vm707_vm14 = vcmask 64512   ;;  %vm425_vm15 = vcmask 60416   ;;  %vm426_vm1 = vsmask.f32 3328  ;;  %s3150_s30 = scalar_lea.vmem %s3383_s1, %s2481_s27 }
  0x35   : > { %v449_v19 = vor.u32 %v447_v14, %v446_v17  ;;  %v450_v20 = vrot.slane %v446_v17, 4  ;;  %v3102_v55 = vsub.s32 0, %v3099_v52  ;;  %vm3118_vm2 = vmand %vm425_vm15, %vm426_vm1  ;;  %vm431_vm3 = vcmask 60419  }
  0x36   : > { %v457_v21 = vor.u32 %v455_v16, %v454_v18  ;;  %v459_v22 = vrot.slane %v454_v18, 4  ;;  %v428_v18 = vld [vmem:[#allocation3] sm:$0xf]  ;;  %vm432_vm4 = vsmask.f32 7950  ;;  %vm1000_vm6 = vcmask 1043456  }
  0x37   : > { %v465_v24 = vld [vmem:[#allocation2] sm:$0xf]  ;;  %v704_v63 = vrot.slane %v3107_v59, %v3102_v55  ;;  %vm933_vm7 = vsmask.f32 7440 }
  0x38   : > { %v458_v23 = vsel %vm442_vm9, %v450_v20, %v457_v21  ;;  %v466_v25 = vsel %vm464_vm10, %v449_v19, %v465_v24  ;;  %v470_v26 = vld [vmem:[#allocation2 + $0x8] sm:$0x1]  ;;  %v434_v20 = vld [vmem:[#allocation3 + $0x8] sm:$0x8]  ;;  %v429_v21 = vsel %vm3118_vm2, 0, %v428_v18  ;;  %vm1045_vm9 = vcmask 1044480  }
  0x39   : > { %469 = vst.msk [vmem:[#allocation2 + $0x4] sm:$0xf] %vm463_vm8, %v458_v23  ;;  %467 = vst [vmem:[#allocation2] sm:$0xf] %v466_v25  ;;  %v471_v27 = vsel %vm3037_vm5, %v459_v22, %v470_v26  ;;  %vm979_vm10 = vsmask.f32 4352 }
  0x3a   : > { %472 = vst [vmem:[#allocation2 + $0x8] sm:$0x1] %v471_v27  ;;  %vm3124_vm5 = vmand %vm431_vm3, %vm432_vm4  ;;  %vm1645_vm3 = vcmask 1045504  }
  0x3b   : > { %430 = vst [vmem:[#allocation3] sm:$0xf] %v429_v21  ;;  %v435_v23 = vsel %vm3124_vm5, 0, %v434_v20  ;;  %vm3163_vm8 = vmor %vm426_vm1, %vm933_vm7  ;;  %vm1584_vm1 = vsmask.f32 6400 }
  0x3c   : > { %436 = vst [vmem:[#allocation3 + $0x8] sm:$0x8] %v435_v23 }
  0x40   : > { %v2802_v28 = vld [vmem:[#allocation2] sm:$0xff]  }
  0x41   : > { %v2803_v29 = vld [vmem:[#allocation2 + $0x8] ss:$0 sps:$4 sm:$0x11]   ;;  %v487_v30 = vshrl.u32 %v2802_v28, 16  ;;  %v489_v31 = vshll.u32 %v2802_v28, 16  ;;  %v649_v41 = vrot.slane %v2802_v28, 1 }
  0x42   : > { %v494_v32 = vshll.u32 %v2803_v29, 16  ;;  %v650_v42 = vrot.slane %v2803_v29, 1 }
  0x43   : > { %v491_v33 = vrot.slane %v489_v31, 1 }
  0x44   : > { %v496_v36 = vrot.slane %v494_v32, 1  ;;  %v651_v43 = vsel %vm648_vm13, %v649_v41, %v650_v42  ;;  %v2497_v41 = vld [vmem:[%s3385_s3 + $0x4] sm:$0xf] }
  0x45   : > { %v492_v37 = vor.u32 %v491_v33, %v487_v30 }
  0x47   : > { %v497_v40 = vsel %vm485_vm11, %v492_v37, %v496_v36 }
  0x48   : > { %2609 = vmatmul.mubr.msk.bf16.vlgmr.msra.gmra.mxu0 %vm498_vm12, %v497_v40  ;;  %2615 = vmatmul.mubr.msk.bf16.vlgmr.msra.gmra.mxu1 %vm498_vm12, %v497_v40  ;;  %v968_v40 = vld [vmem:[%s3385_s3] sm:$0xf] }
  0x49   : > { %2619 = vmatpush3.bf16.msra.mxu0 %v603_v38  ;;  %2625 = vmatpush3.bf16.msra.mxu1 %v656_v39  ;;  %v1053_v42 = vsel %vm1000_vm6, %v968_v40, 0 }
  0x4a   : > { %2620 = vmatprep.mubr.msk.bf16.mxu0 %vm2917_vm0, %v2916_v0  ;;  %2626 = vmatprep.mubr.msk.bf16.mxu1 %vm2917_vm0, %v2916_v0 }
  0x4b   : > { %2630 = vmatprep.subr.mxu0 %v2916_v0  ;;  %2635 = vmatprep.subr.mxu1 %v2916_v0 }
  0x50   : > { %2621 = vmatmul.mubr.msk.bf16.vlgmr.msra.gmra.mxu0 %vm498_vm12, %v2802_v28  ;;  %2627 = vmatmul.mubr.msk.bf16.vlgmr.msra.gmra.mxu1 %vm498_vm12, %v651_v43  ;;  %v1002_v43 = vsel %vm1000_vm6, %v2497_v41, 0  ;;  %vm437_vm12 = vcmask 59392  }
  0x51   : > { %2632 = vmatprep.mubr.msk.f32.mxu0 %vm2917_vm0, %v2916_v0  ;;  %2637 = vmatprep.mubr.msk.f32.mxu1 %vm2917_vm0, %v2916_v0 }
  0x52   : > { %2631 = vmatpush3.msra.mxu0 %v3088_v44  ;;  %2636 = vmatpush3.msra.mxu1 %v3088_v44 }
  0x53   : > { %2646 = vmatprep.subr.bf16.mxu1 %v2916_v0  ;;  %2640 = vmatprep.subr.bf16.mxu0 %v2916_v0 }
 0x108   : > { %v3094_v45 = vpop.f32.mrf.mxu0  ;;  %v593_v46 = vpop.f32.mrf.mxu1 }
 0x10a   : > { %v2610_v48 = vpop.f32.mrf.mxu0  ;;  %v2616_v49 = vpop.f32.mrf.mxu1 }
 0x10c   : > { %v3096_v50 = vpop.f32.mrf.mxu0  ;;  %v596_v51 = vpop.f32.mrf.mxu1 }
 0x10e   : > { %v2611_v53 = vpop.f32.mrf.mxu0  ;;  %v2617_v54 = vpop.f32.mrf.mxu1 }
 0x10f   : > { %v410_v53 = vld [vmem:[%s3150_s30] sm:$0x1]  ;;  %v896_v54 = vsub.s32 2, %v3099_v52 }
 0x110   : > { %v639_v56 = vpop.f32.mrf.mxu0  ;;  %v692_v57 = vpop.f32.mrf.mxu1 }
 0x111   : > { %v640_v58 = vadd.f32 %v639_v56, %v593_v46 }
 0x112   : > { %v2622_v60 = vpop.f32.mrf.mxu0  ;;  %v2628_v61 = vpop.f32.mrf.mxu1 }
 0x113   : > { %v699_v62 = vadd.f32 %v692_v57, %v640_v58  ;;  %v900_v60 = vadd.f32 1.0, %v410_v53 }
 0x114   : > { %v642_v1 = vpop.f32.mrf.mxu0  ;;  %v695_v2 = vpop.f32.mrf.mxu1 }
 0x115   : > { %v643_v3 = vadd.f32 %v642_v1, %v596_v51  ;;  %v705_v6 = vadd.f32 %v704_v63, %v699_v62  ;;  %v890_v51 = vsub.s32 1, %v3099_v52 }
 0x116   : > { %v2623_v4 = vpop.f32.mrf.mxu0  ;;  %v2629_v5 = vpop.f32.mrf.mxu1 }
 0x117   : > { %v700_v7 = vadd.f32 %v695_v2, %v643_v3  ;;  %v708_v9 = vsel %vm707_vm14, %v705_v6, 0.0  ;;  %v891_v58 = vrot.slane %v3107_v59, %v890_v51  ;;  %v904_v3 = vrot.slane %v900_v60, %v3102_v55 }
 0x119   : > { %v706_v8 = vadd.f32 %v704_v63, %v700_v7  ;;  %v897_v63 = vrot.slane %v3107_v59, %v896_v54 }
 0x11b   : > { %v709_v10 = vsel %vm707_vm14, %v706_v8, 0.0 }
 0x11c   : > { %v710_v11 = vadd.f32 %v709_v10, %v708_v9 }
 0x11e   : > { %v711_v12 = vrot.slane %v710_v11, 4 }
 0x120   : > { %v712_v13 = vadd.f32 %v711_v12, %v710_v11 }
 0x122   : > { %v713_v14 = vrot.slane %v712_v13, 2 }
 0x124   : > { %v714_v15 = vadd.f32 %v713_v14, %v712_v13 }
 0x126   : > { %v715_v16 = vrot.slane %v714_v15, 1 }
 0x128   : > { %v716_v17 = vadd.f32 %v715_v16, %v714_v15 }
 0x12a   : > { %2633 = vmatmul.mubr.msk.f32.vlgmr.msra.gmra.mxu0 %vm707_vm14, %v716_v17 }
 0x12b   : > { %2642 = vmatprep.mubr.msk.bf16.mxu0 %vm2917_vm0, %v2916_v0  ;;  %2641 = vmatpush3.bf16.msra.mxu0 %v1002_v43 }
 0x12c   : > { %2652 = vmatprep.subr.bf16.mxu0 %v2916_v0 }
 0x1ea   : > { %v786_v24 = vpop.f32.mrf.mxu0 }
 0x1eb   : > { %v793_v25 = vrot.slane %v786_v24, %v3102_v55 }
 0x1ec   : > { %v2634_v26 = vpop.f32.mrf.mxu0 }
 0x1ed   : > { %v794_v27 = vsub.f32 %v705_v6, %v793_v25  ;;  %v795_v28 = vsub.f32 %v706_v8, %v793_v25  ;;  %v2492_v6 = vld [vmem:[%s3150_s30 + $0x1] ss:$0 sm:$0xff] }
 0x1ef   : > { %v796_v29 = vmul.f32 %v794_v27, %v794_v27  ;;  %v797_v30 = vmul.f32 %v795_v28, %v795_v28 }
 0x1f1   : > { %v798_v31 = vsel %vm707_vm14, %v796_v29, 0.0  ;;  %v799_v32 = vsel %vm707_vm14, %v797_v30, 0.0  ;;  %v957_v29 = vld [vmem:[#allocation3] sm:$0x8] }
 0x1f2   : > { %v800_v33 = vadd.f32 %v799_v32, %v798_v31 }
 0x1f4   : > { %v801_v34 = vrot.slane %v800_v33, 4 }
 0x1f6   : > { %v802_v35 = vadd.f32 %v801_v34, %v800_v33 }
 0x1f8   : > { %v803_v36 = vrot.slane %v802_v35, 2 }
 0x1fa   : > { %v804_v37 = vadd.f32 %v803_v36, %v802_v35 }
 0x1fc   : > { %v805_v38 = vrot.slane %v804_v37, 1 }
 0x1fe   : > { %v806_v39 = vadd.f32 %v805_v38, %v804_v37 }
 0x200   : > { %2638 = vmatmul.mubr.msk.f32.vlgmr.msra.gmra.mxu1 %vm707_vm14, %v806_v39  ;;  %v962_v39 = vld [vmem:[#allocation3 + $0x8] sm:$0xf] }
 0x201   : > { %2648 = vmatprep.mubr.msk.bf16.mxu1 %vm2917_vm0, %v2916_v0  ;;  %2647 = vmatpush3.bf16.msra.mxu1 %v1053_v42 }
 0x202   : > { %2658 = vmatprep.subr.mxu1 %v2916_v0 }
 0x2c0   : > { %v876_v46 = vpop.f32.mrf.mxu1 }
 0x2c1   : > { %v880_v48 = vadd.f32 1e-05, %v876_v46 }
 0x2c2   : > { %v2639_v49 = vpop.f32.mrf.mxu1 }
 0x2c3   : > { %2813 = vrsqrt.f32 %v880_v48 }
 0x2d0   : > { %v2814_v56 = vpop.eup %2813 }
 0x2d1   : > { %v885_v57 = vrot.slane %v2814_v56, %v3102_v55 }
 0x2d3   : > { %v886_v61 = vmul.f32 %v885_v57, %v794_v27  ;;  %v887_v62 = vmul.f32 %v885_v57, %v795_v28 }
 0x2d5   : > { %v892_v1 = vmul.f32 %v891_v58, %v886_v61  ;;  %v893_v2 = vmul.f32 %v891_v58, %v887_v62 }
 0x2d7   : > { %v898_v4 = vadd.f32 %v897_v63, %v892_v1  ;;  %v899_v5 = vadd.f32 %v897_v63, %v893_v2 }
 0x2d9   : > { %v905_v7 = vmul.f32 %v904_v3, %v898_v4  ;;  %v906_v8 = vmul.f32 %v904_v3, %v899_v5  ;;  %v2502_v3 = vld [vmem:[%s3385_s3 + $0x8] sm:$0xf] }
 0x2db   : > { %v911_v9 = vadd.f32 %v2492_v6, %v905_v7  ;;  %v912_v10 = vadd.f32 %v2492_v6, %v906_v8  ;;  %v1103_v6 = vsel %vm1000_vm6, %v2502_v3, 0 }
 0x2dd   : > { %v2493_v11 = vmul.f32 -1.442695, %v911_v9  ;;  %v2494_v12 = vmul.f32 -1.442695, %v912_v10 }
 0x2df   : > { %2815 = vpow2.f32 %v2493_v11 }
 0x2e0   : > { %2817 = vpow2.f32 %v2494_v12 }
 0x2ec   : > { %v2816_v13 = vpop.eup %2815 }
 0x2ed   : > { %v2818_v14 = vpop.eup %2817  ;;  %v919_v15 = vadd.f32 1.0, %v2816_v13 }
 0x2ee   : > { %v920_v16 = vadd.f32 1.0, %v2818_v14 }
 0x2ef   : > { %2819 = vrcp.f32 %v919_v15 }
 0x2f0   : > { %2821 = vrcp.f32 %v920_v16  ;;  %v1150_v16 = vsub.s32 3, %v3099_v52 }
 0x2fc   : > { %v2820_v17 = vpop.eup %2819 }
 0x2fd   : > { %v2822_v18 = vpop.eup %2821  ;;  %v925_v20 = vmul.f32 %v2820_v17, %v911_v9 }
 0x2fe   : > { %v926_v21 = vmul.f32 %v2822_v18, %v912_v10 }
 0x2ff   : > { %v2545_v23 = vpack.c.bf16 %v925_v20, %v925_v20 }
 0x300   : > { %v2546_v24 = vpack.c.bf16 %v926_v21, %v926_v21 }
 0x301   : > { %v936_v25 = vshll.u32 %v2545_v23, 16  ;;  %v939_v26 = vshrl.u32 %v2545_v23, 16  ;;  %v1151_v23 = vrot.slane %v3107_v59, %v1150_v16 }
 0x302   : > { %v945_v27 = vshll.u32 %v2546_v24, 16  ;;  %v949_v28 = vshrl.u32 %v2546_v24, 16 }
 0x303   : > { %v938_v30 = vrot.slane %v936_v25, 5  ;;  %v941_v31 = vrot.slane %v939_v26, 4 }
 0x304   : > { %v947_v32 = vrot.slane %v945_v27, 5  ;;  %v951_v33 = vrot.slane %v949_v28, 4 }
 0x305   : > { %v942_v34 = vor.u32 %v941_v31, %v938_v30  ;;  %v958_v35 = vsel %vm3124_vm5, %v938_v30, %v957_v29 }
 0x306   : > { %v952_v37 = vor.u32 %v951_v33, %v947_v32  ;;  %959 = vst [vmem:[#allocation3] sm:$0x8] %v958_v35 }
 0x307   : > { %v943_v38 = vrot.slane %v942_v34, 4 }
 0x308   : > { %v953_v40 = vrot.slane %v952_v37, 4 }
 0x309   : > { %v948_v41 = vsel %vm3163_vm8, %v943_v38, %v947_v32 }
 0x30a   : > { %961 = vst.msk [vmem:[#allocation3 + $0x4] sm:$0xf] %vm425_vm15, %v948_v41  ;;  %v963_v42 = vsel %vm3118_vm2, %v953_v40, %v962_v39 }
 0x30b   : > { %964 = vst [vmem:[#allocation3 + $0x8] sm:$0xf] %v963_v42 }
 0x30d   : > { %v965_v43 = vld [vmem:[#allocation3] sm:$0xf] }
 0x311   : > { %v966_v46 = vld [vmem:[#allocation3 + $0x4] sm:$0xf] }
 0x312   : > { %v967_v48 = vld [vmem:[#allocation3 + $0x8] sm:$0xf]  ;;  %v2498_v49 = vcombine.low %v965_v43, %v966_v46 }
 0x313   : > { %v2499_v51 = vcombine.low %v967_v48, %v967_v48  ;;  %v2503_v8 = vcombine.low %v966_v46, %v967_v48 }
 0x314   : > { %v1046_v53 = vrot.slane %v2498_v49, 3  ;;  %v981_v54 = vshrl.u32 %v2498_v49, 16  ;;  %v984_v56 = vshll.u32 %v2498_v49, 16 }
 0x315   : > { %v1047_v57 = vrot.slane %v2499_v51, 3  ;;  %v989_v58 = vshrl.u32 %v2499_v51, 16  ;;  %v992_v60 = vshll.u32 %v2499_v51, 16 }
 0x316   : > { %v983_v61 = vrot.slane %v981_v54, 3  ;;  %v986_v62 = vrot.slane %v984_v56, 4 }
 0x317   : > { %v1048_v63 = vsel %vm1045_vm9, %v1046_v53, %v1047_v57  ;;  %v991_v1 = vrot.slane %v989_v58, 3  ;;  %v994_v2 = vrot.slane %v992_v60, 4 }
 0x318   : > { %2649 = vmatmul.mubr.msk.bf16.vlgmr.msra.gmra.mxu1 %vm707_vm14, %v1048_v63  ;;  %v987_v4 = vor.u32 %v986_v62, %v983_v61  ;;  %v1412_v63 = vld [vmem:[#allocation6] sm:$0xf] }
 0x319   : > { %v995_v5 = vor.u32 %v994_v2, %v991_v1  ;;  %2659 = vmatpush3.msra.mxu1 %v3088_v44  ;;  %2660 = vmatprep.mubr.msk.f32.mxu1 %vm2917_vm0, %v2916_v0  ;;  %v1414_v1 = vld [vmem:[#allocation6 + $0x4] sm:$0xf]  ;;  %v1485_v2 = vsel %vm1000_vm6, %v1412_v63, 0 }
 0x31a   : > { %2663 = vmatprep.subr.mxu1 %v2916_v0  ;;  %v1439_v3 = vsel %vm1000_vm6, %v1414_v1, 0  ;;  %v1583_v1 = vld [vmem:[#allocation6 + $0xc] sm:$0xf] }
 0x31b   : > { %v996_v7 = vsel %vm979_vm10, %v987_v4, %v995_v5  ;;  %v2918_v4 = vmov 0  }
 0x31c   : > { %2643 = vmatmul.mubr.msk.bf16.vlgmr.msra.gmra.mxu0 %vm707_vm14, %v996_v7  ;;  %438 = vst.msk [vmem:[#allocation3 + $0xc] sm:$0x7] %vm437_vm12, %v2918_v4 }
 0x31d   : > { %2653 = vmatpush3.bf16.msra.mxu0 %v1103_v6  ;;  %2654 = vmatprep.mubr.msk.bf16.mxu0 %vm2917_vm0, %v2916_v0 }
 0x31e   : > { %2668 = vmatprep.subr.bf16.mxu0 %v2916_v0 }
 0x324   : > { %2655 = vmatmul.mubr.msk.bf16.vlgmr.msra.gmra.mxu0 %vm707_vm14, %v2503_v8  ;;  %v1336_v8 = vsub.s32 4, %v3099_v52 }
 0x325   : > { %2670 = vmatprep.mubr.msk.bf16.mxu0 %vm2917_vm0, %v2916_v0  ;;  %2669 = vmatpush3.bf16.msra.mxu0 %v1439_v3 }
 0x326   : > { %2680 = vmatprep.subr.bf16.mxu0 %v2916_v0 }
 0x3d8   : > { %v1089_v9 = vpop.f32.mrf.mxu1 }
 0x3da   : > { %v2650_v10 = vpop.f32.mrf.mxu1 }
 0x3db   : > { %v1342_v10 = vsub.s32 5, %v3099_v52 }
 0x3dc   : > { %v1038_v11 = vpop.f32.mrf.mxu0  ;;  %v1092_v12 = vpop.f32.mrf.mxu1 }
 0x3dd   : > { %v1090_v18 = vadd.f32 %v1089_v9, %v1038_v11  ;;  %v412_v9 = vld [vmem:[%s3150_s30 + $0x2] sm:$0x1] }
 0x3de   : > { %v2644_v13 = vpop.f32.mrf.mxu0  ;;  %v2651_v14 = vpop.f32.mrf.mxu1 }
 0x3df   : > { %v1337_v13 = vrot.slane %v3107_v59, %v1336_v8  ;;  %v1346_v14 = vadd.f32 1.0, %v412_v9 }
 0x3e0   : > { %v1041_v15 = vpop.f32.mrf.mxu0 }
 0x3e1   : > { %v1093_v25 = vadd.f32 %v1092_v12, %v1041_v15 }
 0x3e2   : > { %v2645_v17 = vpop.f32.mrf.mxu0 }
 0x3e3   : > { %v1343_v17 = vrot.slane %v3107_v59, %v1342_v10  ;;  %v1529_v10 = vld [vmem:[#allocation6 + $0x8] sm:$0xf] }
 0x3e4   : > { %v1139_v20 = vpop.f32.mrf.mxu0 }
 0x3e5   : > { %v1146_v21 = vadd.f32 %v1139_v20, %v1090_v18 }
 0x3e6   : > { %v2656_v24 = vpop.f32.mrf.mxu0 }
 0x3e7   : > { %v1152_v27 = vadd.f32 %v1151_v23, %v1146_v21  ;;  %v1350_v21 = vrot.slane %v1346_v14, %v3102_v55 }
 0x3e8   : > { %v1142_v26 = vpop.f32.mrf.mxu0 }
 0x3e9   : > { %v1147_v28 = vadd.f32 %v1142_v26, %v1093_v25  ;;  %v1154_v31 = vsel %vm707_vm14, %v1152_v27, 0.0  ;;  %v2507_v25 = vld [vmem:[%s3150_s30 + $0x3] ss:$0 sm:$0xff] }
 0x3ea   : > { %v2657_v29 = vpop.f32.mrf.mxu0 }
 0x3eb   : > { %v1153_v30 = vadd.f32 %v1151_v23, %v1147_v28 }
 0x3ed   : > { %v1155_v32 = vsel %vm707_vm14, %v1153_v30, 0.0 }
 0x3ee   : > { %v1156_v33 = vadd.f32 %v1155_v32, %v1154_v31 }
 0x3f0   : > { %v1157_v34 = vrot.slane %v1156_v33, 4 }
 0x3f2   : > { %v1158_v35 = vadd.f32 %v1157_v34, %v1156_v33 }
 0x3f4   : > { %v1159_v37 = vrot.slane %v1158_v35, 2 }
 0x3f6   : > { %v1160_v38 = vadd.f32 %v1159_v37, %v1158_v35 }
 0x3f8   : > { %v1161_v39 = vrot.slane %v1160_v38, 1 }
 0x3fa   : > { %v1162_v40 = vadd.f32 %v1161_v39, %v1160_v38 }
 0x3fc   : > { %2661 = vmatmul.mubr.msk.f32.vlgmr.msra.gmra.mxu1 %vm707_vm14, %v1162_v40 }
 0x3fd   : > { %2664 = vmatpush3.msra.mxu1 %v3088_v44  ;;  %2665 = vmatprep.mubr.msk.f32.mxu1 %vm2917_vm0, %v2916_v0 }
 0x3fe   : > { %2674 = vmatprep.subr.bf16.mxu1 %v2916_v0 }
 0x4bc   : > { %v1232_v41 = vpop.f32.mrf.mxu1 }
 0x4bd   : > { %v1239_v42 = vrot.slane %v1232_v41, %v3102_v55 }
 0x4be   : > { %v2662_v43 = vpop.f32.mrf.mxu1 }
 0x4bf   : > { %v1240_v46 = vsub.f32 %v1152_v27, %v1239_v42  ;;  %v1241_v48 = vsub.f32 %v1153_v30, %v1239_v42 }
 0x4c1   : > { %v1242_v49 = vmul.f32 %v1240_v46, %v1240_v46  ;;  %v1243_v51 = vmul.f32 %v1241_v48, %v1241_v48 }
 0x4c3   : > { %v1244_v53 = vsel %vm707_vm14, %v1242_v49, 0.0  ;;  %v1245_v54 = vsel %vm707_vm14, %v1243_v51, 0.0 }
 0x4c4   : > { %v1246_v56 = vadd.f32 %v1245_v54, %v1244_v53  ;;  %v1401_v54 = vld [vmem:[#allocation3] sm:$0x8] }
 0x4c6   : > { %v1247_v57 = vrot.slane %v1246_v56, 4 }
 0x4c8   : > { %v1248_v44 = vadd.f32 %v1247_v57, %v1246_v56 }
 0x4ca   : > { %v1249_v58 = vrot.slane %v1248_v44, 2 }
 0x4cc   : > { %v1250_v60 = vadd.f32 %v1249_v58, %v1248_v44 }
 0x4ce   : > { %v1251_v61 = vrot.slane %v1250_v60, 1 }
 0x4d0   : > { %v1252_v62 = vadd.f32 %v1251_v61, %v1250_v60 }
 0x4d2   : > { %2666 = vmatmul.mubr.msk.f32.vlgmr.msra.gmra.mxu1 %vm707_vm14, %v1252_v62  ;;  %v1405_v62 = vld [vmem:[#allocation3 + $0x8] sm:$0xf] }
 0x4d3   : > { %2676 = vmatprep.mubr.msk.bf16.mxu1 %vm2917_vm0, %v2916_v0  ;;  %2675 = vmatpush3.bf16.msra.mxu1 %v1485_v2 }
 0x4d4   : > { %2686 = vmatprep.subr.bf16.mxu1 %v2916_v0 }
 0x592   : > { %v1322_v5 = vpop.f32.mrf.mxu1 }
 0x593   : > { %v1326_v6 = vadd.f32 1e-05, %v1322_v5  ;;  %v1598_v5 = vsel %vm1000_vm6, %v1583_v1, 0 }
 0x594   : > { %v2667_v7 = vpop.f32.mrf.mxu1 }
 0x595   : > { %2823 = vrsqrt.f32 %v1326_v6 }
 0x5a2   : > { %v2824_v11 = vpop.eup %2823 }
 0x5a3   : > { %v1331_v12 = vrot.slane %v2824_v11, %v3102_v55 }
 0x5a5   : > { %v1332_v15 = vmul.f32 %v1331_v12, %v1240_v46  ;;  %v1333_v16 = vmul.f32 %v1331_v12, %v1241_v48 }
 0x5a7   : > { %v1338_v18 = vmul.f32 %v1337_v13, %v1332_v15  ;;  %v1339_v20 = vmul.f32 %v1337_v13, %v1333_v16  ;;  %v1699_v15 = vld [vmem:[#allocation6 + $0x14] sm:$0xf] }
 0x5a9   : > { %v1344_v23 = vadd.f32 %v1343_v17, %v1338_v18  ;;  %v1345_v24 = vadd.f32 %v1343_v17, %v1339_v20  ;;  %v1537_v20 = vsel %vm1000_vm6, %v1529_v10, 0 }
 0x5ab   : > { %v1351_v26 = vmul.f32 %v1350_v21, %v1344_v23  ;;  %v1352_v27 = vmul.f32 %v1350_v21, %v1345_v24  ;;  %v1712_v24 = vsel %vm1000_vm6, %v1699_v15, 0 }
 0x5ad   : > { %v1357_v28 = vadd.f32 %v2507_v25, %v1351_v26  ;;  %v1358_v29 = vadd.f32 %v2507_v25, %v1352_v27 }
 0x5af   : > { %v2508_v30 = vmul.f32 -1.442695, %v1357_v28  ;;  %v2509_v31 = vmul.f32 -1.442695, %v1358_v29 }
 0x5b1   : > { %2825 = vpow2.f32 %v2508_v30 }
 0x5b2   : > { %2827 = vpow2.f32 %v2509_v31 }
 0x5be   : > { %v2826_v32 = vpop.eup %2825 }
 0x5bf   : > { %v2828_v33 = vpop.eup %2827  ;;  %v1365_v34 = vadd.f32 1.0, %v2826_v32  ;;  %v1644_v32 = vld [vmem:[#allocation6 + $0x10] sm:$0xf] }
 0x5c0   : > { %v1366_v35 = vadd.f32 1.0, %v2828_v33 }
 0x5c1   : > { %2829 = vrcp.f32 %v1365_v34 }
 0x5c2   : > { %2831 = vrcp.f32 %v1366_v35  ;;  %v1812_v35 = vld [vmem:[#allocation6 + $0x1c] sm:$0xf] }
 0x5ce   : > { %v2830_v59 = vpop.eup %2829 }
 0x5cf   : > { %v2832_v37 = vpop.eup %2831  ;;  %v1371_v55 = vmul.f32 %v2830_v59, %v1357_v28  ;;  %v1653_v59 = vsel %vm1000_vm6, %v1644_v32, 0 }
 0x5d0   : > { %v1372_v38 = vmul.f32 %v2832_v37, %v1358_v29 }
 0x5d1   : > { %v2547_v39 = vpack.c.bf16 %v1371_v55, %v1371_v55 }
 0x5d2   : > { %v2548_v40 = vpack.c.bf16 %v1372_v38, %v1372_v38  ;;  %v1824_v38 = vsel %vm1000_vm6, %v1812_v35, 0 }
 0x5d3   : > { %v1380_v41 = vshll.u32 %v2547_v39, 16  ;;  %v1383_v42 = vshrl.u32 %v2547_v39, 16 }
 0x5d4   : > { %v1389_v43 = vshll.u32 %v2548_v40, 16  ;;  %v1393_v46 = vshrl.u32 %v2548_v40, 16 }
 0x5d5   : > { %v1382_v48 = vrot.slane %v1380_v41, 5  ;;  %v1385_v49 = vrot.slane %v1383_v42, 4 }
 0x5d6   : > { %v1391_v51 = vrot.slane %v1389_v43, 5  ;;  %v1395_v53 = vrot.slane %v1393_v46, 4 }
 0x5d7   : > { %v1386_v56 = vor.u32 %v1385_v49, %v1382_v48  ;;  %v1402_v57 = vsel %vm3124_vm5, %v1382_v48, %v1401_v54  ;;  %v1758_v49 = vld [vmem:[#allocation6 + $0x18] sm:$0xf]  ;;  %v1922_v54 = vld [vmem:[#allocation6 + $0x24] sm:$0xf] }
 0x5d8   : > { %v1396_v44 = vor.u32 %v1395_v53, %v1391_v51  ;;  %1403 = vst [vmem:[#allocation3] sm:$0x8] %v1402_v57  ;;  %v1766_v57 = vsel %vm1000_vm6, %v1758_v49, 0 }
 0x5d9   : > { %v1387_v58 = vrot.slane %v1386_v56, 4 }
 0x5da   : > { %v1397_v60 = vrot.slane %v1396_v44, 4  ;;  %v3276_v44 = vld [vmem:[#allocation3 + $0xc] ss:$0 sps:$4 sm:$0x77]  }
 0x5db   : > { %v1392_v61 = vsel %vm3163_vm8, %v1387_v58, %v1391_v51  ;;  %v1933_v1 = vshll.u32 %v3276_v44, 16 }
 0x5dc   : > { %1404 = vst.msk [vmem:[#allocation3 + $0x4] sm:$0xf] %vm425_vm15, %v1392_v61  ;;  %v1406_v63 = vsel %vm3118_vm2, %v1397_v60, %v1405_v62  ;;  %vm1700_vm2 = vsmask.f32 5376  ;;  %v1941_v60 = vsel %vm1000_vm6, %v1922_v54, 0 }
 0x5dd   : > { %1407 = vst [vmem:[#allocation3 + $0x8] sm:$0xf] %v1406_v63 }
 0x5df   : > { %v1408_v2 = vld [vmem:[#allocation3] sm:$0xf] }
 0x5e3   : > { %v1409_v3 = vld [vmem:[#allocation3 + $0x4] sm:$0xf] }
 0x5e4   : > { %v1410_v4 = vld [vmem:[#allocation3 + $0x8] sm:$0xf]  ;;  %v3224_v22 = vcombine.low %v1408_v2, %v1409_v3 }
 0x5e5   : > { %v3227_v6 = vcombine.low %v1410_v4, %v1410_v4  ;;  %v3258_v37 = vcombine.low %v1409_v3, %v1410_v4  ;;  %v1870_v4 = vld [vmem:[#allocation6 + $0x20] sm:$0xf] }
 0x5e6   : > { %2677 = vmatmul.mubr.msk.bf16.vlgmr.msra.gmra.mxu1 %vm707_vm14, %v3224_v22  ;;  %v3232_v36 = vshrl.u32 %v3224_v22, 16  ;;  %v1426_v19 = vshll.u32 %v3224_v22, 16  ;;  %v1530_v30 = vrot.slane %v3224_v22, 1  ;;  %v1646_v46 = vrot.slane %v3224_v22, 2 }
 0x5e7   : > { %2687 = vmatpush3.bf16.msra.mxu1 %v1598_v5  ;;  %v1431_v7 = vshll.u32 %v3227_v6, 16  ;;  %2688 = vmatprep.mubr.msk.bf16.mxu1 %vm2917_vm0, %v2916_v0  ;;  %v1588_v8 = vshrl.u32 %v3227_v6, 16  ;;  %v1531_v31 = vrot.slane %v3227_v6, 1  ;;  %v1647_v48 = vrot.slane %v3227_v6, 2 }
 0x5e8   : > { %v1428_v9 = vrot.slane %v1426_v19, 1  ;;  %v1585_v11 = vrot.slane %v3232_v36, 1  ;;  %v1586_v12 = vrot.slane %v1426_v19, 2  ;;  %2698 = vmatprep.subr.bf16.mxu1 %v2916_v0  ;;  %v1701_v25 = vrot.slane %v3232_v36, 2 }
 0x5e9   : > { %v1590_v13 = vrot.slane %v1588_v8, 1  ;;  %v1591_v14 = vrot.slane %v1431_v7, 2  ;;  %v1433_v17 = vrot.slane %v1431_v7, 1  ;;  %v1702_v27 = vrot.slane %v1426_v19, 3 }
 0x5ea   : > { %v1429_v16 = vor.u32 %v1428_v9, %v3232_v36  ;;  %v1587_v18 = vor.u32 %v1586_v12, %v1585_v11  ;;  %v1704_v28 = vrot.slane %v1588_v8, 2  ;;  %v1705_v29 = vrot.slane %v1431_v7, 3 }
 0x5eb   : > { %v1592_v21 = vor.u32 %v1591_v14, %v1590_v13  ;;  %v1703_v33 = vor.u32 %v1702_v27, %v1701_v25  ;;  %v1532_v55 = vsel %vm648_vm13, %v1530_v30, %v1531_v31  ;;  %v1813_v39 = vrot.slane %v3232_v36, 3  ;;  %v1987_v14 = vld [vmem:[#allocation6 + $0x28] sm:$0xf] }
 0x5ec   : > { %v1434_v23 = vsel %vm485_vm11, %v1429_v16, %v1433_v17  ;;  %v1706_v34 = vor.u32 %v1705_v29, %v1704_v28  ;;  %v1814_v41 = vrot.slane %v1426_v19, 4  ;;  %v1816_v42 = vrot.slane %v1588_v8, 3  ;;  %v2155_v17 = vld [vmem:[#allocation6 + $0x34] sm:$0xf]  ;;  %v2101_v29 = vld [vmem:[#allocation6 + $0x30] sm:$0xf] }
 0x5ed   : > { %2671 = vmatmul.mubr.msk.bf16.vlgmr.msra.gmra.mxu0 %vm707_vm14, %v1434_v23  ;;  %v1593_v26 = vsel %vm1584_vm1, %v1587_v18, %v1592_v21  ;;  %v1817_v43 = vrot.slane %v1431_v7, 4  ;;  %v1928_v56 = vshll.u32 %v3258_v37, 16  ;;  %v1648_v58 = vsel %vm1645_vm3, %v1646_v46, %v1647_v48  ;;  %v2041_v7 = vld [vmem:[#allocation6 + $0x2c] sm:$0xf]  ;;  %v2812_v48 = vld [vmem:[%s3388_s6] sm:$0xff]  }
 0x5ee   : > { %2681 = vmatpush3.bf16.msra.mxu0 %v1537_v20  ;;  %2689 = vmatmul.mubr.msk.bf16.vlgmr.msra.gmra.mxu1 %vm707_vm14, %v1593_v26  ;;  %v1707_v40 = vsel %vm1700_vm2, %v1703_v33, %v1706_v34  ;;  %v1815_v51 = vor.u32 %v1814_v41, %v1813_v39  ;;  %v1926_v63 = vshrl.u32 %v3258_v37, 16  ;;  %v1759_v2 = vrot.slane %v3224_v22, 3 }
 0x5ef   : > { %2699 = vmatpush3.bf16.msra.mxu1 %v1712_v24  ;;  %2682 = vmatprep.mubr.msk.bf16.mxu0 %vm2917_vm0, %v2916_v0  ;;  %v1818_v53 = vor.u32 %v1817_v43, %v1816_v42  ;;  %v1930_v62 = vrot.slane %v1928_v56, 1  ;;  %v1760_v3 = vrot.slane %v3227_v6, 3  ;;  %v2045_v5 = vshrl.u32 %v3276_v44, 16  ;;  %v2811_v43 = vld [vmem:[%s3388_s6 + $0x8] ss:$0 sps:$4 sm:$0xff]  }
 0x5f0   : > { %2692 = vmatprep.subr.bf16.mxu0 %v2916_v0  ;;  %2700 = vmatprep.mubr.msk.bf16.mxu1 %vm2917_vm0, %v2916_v0  ;;  %v1935_v19 = vrot.slane %v1933_v1, 1  ;;  %v1876_v8 = vsel %vm1000_vm6, %v1870_v4, 0  ;;  %v2055_v10 = vsel %vm1000_vm6, %v2041_v7, 0  ;;  %v2042_v11 = vrot.slane %v1926_v63, 1 }
 0x5f1   : > { %2710 = vmatprep.subr.bf16.mxu1 %v2916_v0  ;;  %v1819_v61 = vsel %vm979_vm10, %v1815_v51, %v1818_v53  ;;  %v1931_v36 = vor.u32 %v1930_v62, %v1926_v63  ;;  %v1761_v9 = vsel %vm1045_vm9, %v1759_v2, %v1760_v3  ;;  %v2047_v22 = vrot.slane %v2045_v5, 1 }
 0x5f2   : > { %v2043_v12 = vrot.slane %v1928_v56, 2  ;;  %v2048_v13 = vrot.slane %v1933_v1, 2  ;;  %v1995_v18 = vsel %vm1000_vm6, %v1987_v14, 0  ;;  %v2167_v20 = vsel %vm1000_vm6, %v2155_v17, 0 }
 0x5f3   : > { %v1936_v6 = vsel %vm485_vm11, %v1931_v36, %v1935_v19  ;;  %v2159_v21 = vrot.slane %v2045_v5, 2  ;;  %v2156_v24 = vrot.slane %v1926_v63, 2  ;;  %v2157_v25 = vrot.slane %v1928_v56, 3 }
 0x5f4   : > { %v2044_v15 = vor.u32 %v2043_v12, %v2042_v11  ;;  %v2049_v16 = vor.u32 %v2048_v13, %v2047_v22  ;;  %v2160_v26 = vrot.slane %v1933_v1, 3  ;;  %v1988_v27 = vrot.slane %v3258_v37, 1 }
 0x5f5   : > { %2683 = vmatmul.mubr.msk.bf16.vlgmr.msra.gmra.mxu0 %vm707_vm14, %v1532_v55  ;;  %v1989_v28 = vrot.slane %v3276_v44, 1  ;;  %v2158_v30 = vor.u32 %v2157_v25, %v2156_v24  ;;  %v2109_v32 = vsel %vm1000_vm6, %v2101_v29, 0  ;;  %v2102_v35 = vrot.slane %v3258_v37, 2  ;;  %v2213_v55 = vld [vmem:[#allocation6 + $0x38] sm:$0xf] }
 0x5f6   : > { %2693 = vmatpush3.bf16.msra.mxu0 %v1653_v59  ;;  %2701 = vmatmul.mubr.msk.bf16.vlgmr.msra.gmra.mxu1 %vm707_vm14, %v1707_v40  ;;  %v2050_v23 = vsel %vm1584_vm1, %v2044_v15, %v2049_v16  ;;  %v2161_v31 = vor.u32 %v2160_v26, %v2159_v21  ;;  %v2103_v59 = vrot.slane %v3276_v44, 2  ;;  %v2214_v40 = vrot.slane %v3258_v37, 3 }
 0x5f7   : > { %2711 = vmatpush3.bf16.msra.mxu1 %v1824_v38  ;;  %2694 = vmatprep.mubr.msk.bf16.mxu0 %vm2917_vm0, %v2916_v0  ;;  %v1990_v33 = vsel %vm648_vm13, %v1988_v27, %v1989_v28  ;;  %v2221_v38 = vsel %vm1000_vm6, %v2213_v55, 0  ;;  %v2215_v41 = vrot.slane %v3276_v44, 3  ;;  %v2320_v46 = vsel %vm1000_vm6, %v2811_v43, 0 }
 0x5f8   : > { %2704 = vmatprep.subr.bf16.mxu0 %v2916_v0  ;;  %2712 = vmatprep.mubr.msk.bf16.mxu1 %vm2917_vm0, %v2916_v0  ;;  %v2162_v34 = vsel %vm1700_vm2, %v2158_v30, %v2161_v31  ;;  %v2104_v39 = vsel %vm1645_vm3, %v2102_v35, %v2103_v59 }
 0x5f9   : > { %2722 = vmatprep.subr.bf16.mxu1 %v2916_v0  ;;  %v2216_v42 = vsel %vm1045_vm9, %v2214_v40, %v2215_v41 }
 0x5fd   : > { %2695 = vmatmul.mubr.msk.bf16.vlgmr.msra.gmra.mxu0 %vm707_vm14, %v1648_v58 }
 0x5fe   : > { %2705 = vmatpush3.bf16.msra.mxu0 %v1766_v57  ;;  %2713 = vmatmul.mubr.msk.bf16.vlgmr.msra.gmra.mxu1 %vm707_vm14, %v1819_v61 }
 0x5ff   : > { %2723 = vmatpush3.bf16.msra.mxu1 %v1941_v60  ;;  %2706 = vmatprep.mubr.msk.bf16.mxu0 %vm2917_vm0, %v2916_v0 }
 0x600   : > { %2716 = vmatprep.subr.bf16.mxu0 %v2916_v0  ;;  %2724 = vmatprep.mubr.msk.bf16.mxu1 %vm2917_vm0, %v2916_v0 }
 0x601   : > { %2734 = vmatprep.subr.bf16.mxu1 %v2916_v0 }
 0x605   : > { %2707 = vmatmul.mubr.msk.bf16.vlgmr.msra.gmra.mxu0 %vm707_vm14, %v1761_v9 }
 0x606   : > { %2717 = vmatpush3.bf16.msra.mxu0 %v1876_v8  ;;  %2725 = vmatmul.mubr.msk.bf16.vlgmr.msra.gmra.mxu1 %vm707_vm14, %v1936_v6 }
 0x607   : > { %2735 = vmatpush3.bf16.msra.mxu1 %v2055_v10  ;;  %2718 = vmatprep.mubr.msk.bf16.mxu0 %vm2917_vm0, %v2916_v0 }
 0x608   : > { %2728 = vmatprep.subr.bf16.mxu0 %v2916_v0  ;;  %2736 = vmatprep.mubr.msk.bf16.mxu1 %vm2917_vm0, %v2916_v0 }
 0x609   : > { %2746 = vmatprep.subr.bf16.mxu1 %v2916_v0 }
 0x60d   : > { %2719 = vmatmul.mubr.msk.bf16.vlgmr.msra.gmra.mxu0 %vm707_vm14, %v3258_v37 }
 0x60e   : > { %2729 = vmatpush3.bf16.msra.mxu0 %v1995_v18  ;;  %2737 = vmatmul.mubr.msk.bf16.vlgmr.msra.gmra.mxu1 %vm707_vm14, %v2050_v23 }
 0x60f   : > { %2747 = vmatpush3.bf16.msra.mxu1 %v2167_v20  ;;  %2730 = vmatprep.mubr.msk.bf16.mxu0 %vm2917_vm0, %v2916_v0 }
 0x610   : > { %2740 = vmatprep.subr.bf16.mxu0 %v2916_v0  ;;  %2748 = vmatprep.mubr.msk.bf16.mxu1 %vm2917_vm0, %v2916_v0 }
 0x611   : > { %2758 = vmatprep.subr.bf16.mxu1 %v2916_v0 }
 0x615   : > { %2731 = vmatmul.mubr.msk.bf16.vlgmr.msra.gmra.mxu0 %vm707_vm14, %v1990_v33 }
 0x616   : > { %2741 = vmatpush3.bf16.msra.mxu0 %v2109_v32  ;;  %2749 = vmatmul.mubr.msk.bf16.vlgmr.msra.gmra.mxu1 %vm707_vm14, %v2162_v34 }
 0x617   : > { %2742 = vmatprep.mubr.msk.bf16.mxu0 %vm2917_vm0, %v2916_v0  ;;  %2752 = vmatprep.subr.bf16.mxu0 %v2916_v0 }
 0x618   : > { %2762 = vmatprep.mubr.msk.bf16.mxu1 %vm2917_vm0, %v2916_v0  ;;  %2759 = vmatpush3.bf16.msra.mxu1 %v2320_v46 }
 0x619   : > { %2760 = vmatprep.subr.bf16.mxu1 %v2916_v0 }
 0x61c   : > { %2761 = vmatpush3.bf16.msra.mxu1 %v2812_v48 }
 0x61d   : > { %2743 = vmatmul.mubr.msk.bf16.vlgmr.msra.gmra.mxu0 %vm707_vm14, %v2104_v39 }
 0x61e   : > { %2753 = vmatpush3.bf16.msra.mxu0 %v2221_v38  ;;  %2754 = vmatprep.mubr.msk.bf16.mxu0 %vm2917_vm0, %v2916_v0 }
 0x625   : > { %2755 = vmatmul.mubr.msk.bf16.vlgmr.msra.gmra.mxu0 %vm707_vm14, %v2216_v42  ;;  %vm2315_vm14 = vcmask 195584  }
 0x6a6   : > { %v1521_v37 = vpop.f32.mrf.mxu1 }
 0x6a8   : > { %v2678_v49 = vpop.f32.mrf.mxu1 }
 0x6aa   : > { %v1524_v51 = vpop.f32.mrf.mxu1 }
 0x6ac   : > { %v2679_v53 = vpop.f32.mrf.mxu1 }
 0x6ad   : > { %v1475_v54 = vpop.f32.mrf.mxu0 }
 0x6ae   : > { %v1634_v56 = vpop.f32.mrf.mxu1  ;;  %v1522_v9 = vadd.f32 %v1521_v37, %v1475_v54 }
 0x6af   : > { %v2672_v57 = vpop.f32.mrf.mxu0 }
 0x6b0   : > { %v2690_v44 = vpop.f32.mrf.mxu1 }
 0x6b1   : > { %v1478_v58 = vpop.f32.mrf.mxu0 }
 0x6b2   : > { %v1637_v60 = vpop.f32.mrf.mxu1  ;;  %v1525_v13 = vadd.f32 %v1524_v51, %v1478_v58 }
 0x6b3   : > { %v2673_v61 = vpop.f32.mrf.mxu0 }
 0x6b4   : > { %v2691_v62 = vpop.f32.mrf.mxu1 }
 0x6b5   : > { %v1573_v63 = vpop.f32.mrf.mxu0 }
 0x6b6   : > { %v1748_v1 = vpop.f32.mrf.mxu1  ;;  %v1580_v6 = vadd.f32 %v1573_v63, %v1522_v9  ;;  %v2531_v9 = vld [vmem:[%s3390_s8] ss:$0 sm:$0xff] }
 0x6b7   : > { %v2684_v2 = vpop.f32.mrf.mxu0 }
 0x6b8   : > { %v2702_v3 = vpop.f32.mrf.mxu1  ;;  %v1641_v17 = vadd.f32 %v1634_v56, %v1580_v6 }
 0x6b9   : > { %v1576_v4 = vpop.f32.mrf.mxu0 }
 0x6ba   : > { %v1751_v5 = vpop.f32.mrf.mxu1  ;;  %v1581_v16 = vadd.f32 %v1576_v4, %v1525_v13 }
 0x6bb   : > { %v2685_v0 = vpop.f32.mrf.mxu0 }
 0x6bc   : > { %v2703_v36 = vpop.f32.mrf.mxu1  ;;  %v1642_v25 = vadd.f32 %v1637_v60, %v1581_v16  ;;  %v2276_v0 = vand.u32 127, %v547_v47 }
 0x6bd   : > { %v1689_v19 = vpop.f32.mrf.mxu0 }
 0x6be   : > { %v1860_v7 = vpop.f32.mrf.mxu1  ;;  %v1696_v21 = vadd.f32 %v1689_v19, %v1641_v17  ;;  %vm2277_vm0 = vcmp.ge.s32.totalorder %v2276_v0, 8  ;;  %vm2278_vm11 = vcmp.lt.s32.totalorder %v2276_v0, 16 }
 0x6bf   : > { %v2696_v8 = vpop.f32.mrf.mxu0  ;;  %vm3353_vm13 = vmand %vm2277_vm0, %vm2278_vm11 }
 0x6c0   : > { %v2714_v10 = vpop.f32.mrf.mxu1  ;;  %v1755_v29 = vadd.f32 %v1748_v1, %v1696_v21 }
 0x6c1   : > { %v1692_v22 = vpop.f32.mrf.mxu0 }
 0x6c2   : > { %v1863_v11 = vpop.f32.mrf.mxu1  ;;  %v1697_v28 = vadd.f32 %v1692_v22, %v1642_v25 }
 0x6c3   : > { %v2697_v12 = vpop.f32.mrf.mxu0 }
 0x6c4   : > { %v2715_v14 = vpop.f32.mrf.mxu1  ;;  %v1756_v35 = vadd.f32 %v1751_v5, %v1697_v28 }
 0x6c5   : > { %v1802_v15 = vpop.f32.mrf.mxu0 }
 0x6c6   : > { %v1977_v18 = vpop.f32.mrf.mxu1  ;;  %v1809_v32 = vadd.f32 %v1802_v15, %v1755_v29 }
 0x6c7   : > { %v2708_v20 = vpop.f32.mrf.mxu0 }
 0x6c8   : > { %v2726_v23 = vpop.f32.mrf.mxu1  ;;  %v1867_v39 = vadd.f32 %v1860_v7, %v1809_v32 }
 0x6c9   : > { %v1805_v24 = vpop.f32.mrf.mxu0 }
 0x6ca   : > { %v1980_v26 = vpop.f32.mrf.mxu1  ;;  %v1810_v38 = vadd.f32 %v1805_v24, %v1756_v35 }
 0x6cb   : > { %v2709_v27 = vpop.f32.mrf.mxu0 }
 0x6cc   : > { %v2727_v30 = vpop.f32.mrf.mxu1  ;;  %v1868_v48 = vadd.f32 %v1863_v11, %v1810_v38  ;;  %v2365_v38 = vsub.s32 7, %v3099_v52 }
 0x6cd   : > { %v1912_v31 = vpop.f32.mrf.mxu0 }
 0x6ce   : > { %v2091_v33 = vpop.f32.mrf.mxu1  ;;  %v1919_v42 = vadd.f32 %v1912_v31, %v1867_v39  ;;  %v2841_v39 = vld [vmem:[%s3389_s7] sm:$0xff] }
 0x6cf   : > { %v2720_v34 = vpop.f32.mrf.mxu0 }
 0x6d0   : > { %v2738_v59 = vpop.f32.mrf.mxu1  ;;  %v1984_v53 = vadd.f32 %v1977_v18, %v1919_v42 }
 0x6d1   : > { %v1915_v55 = vpop.f32.mrf.mxu0 }
 0x6d2   : > { %v2094_v40 = vpop.f32.mrf.mxu1  ;;  %v1920_v51 = vadd.f32 %v1915_v55, %v1868_v48  ;;  %v549_v55 = vsub.s32 6, %v3099_v52 }
 0x6d3   : > { %v2721_v41 = vpop.f32.mrf.mxu0 }
 0x6d4   : > { %v2739_v43 = vpop.f32.mrf.mxu1  ;;  %v1985_v60 = vadd.f32 %v1980_v26, %v1920_v51  ;;  %v2366_v41 = vrot.slane %v2841_v39, %v2365_v38 }
 0x6d5   : > { %v2031_v46 = vpop.f32.mrf.mxu0 }
 0x6d6   : > { %v2203_v37 = vpop.f32.mrf.mxu1  ;;  %v2038_v57 = vadd.f32 %v2031_v46, %v1984_v53 }
 0x6d7   : > { %v2732_v49 = vpop.f32.mrf.mxu0 }
 0x6d8   : > { %v2750_v54 = vpop.f32.mrf.mxu1  ;;  %v2098_v1 = vadd.f32 %v2091_v33, %v2038_v57 }
 0x6d9   : > { %v2034_v56 = vpop.f32.mrf.mxu0 }
 0x6da   : > { %v2206_v44 = vpop.f32.mrf.mxu1  ;;  %v2039_v63 = vadd.f32 %v2034_v56, %v1985_v60 }
 0x6db   : > { %v2733_v58 = vpop.f32.mrf.mxu0 }
 0x6dc   : > { %v2751_v61 = vpop.f32.mrf.mxu1  ;;  %v2099_v5 = vadd.f32 %v2094_v40, %v2039_v63  ;;  %v550_v40 = vrot.slane %v2841_v39, %v549_v55 }
 0x6dd   : > { %v2145_v62 = vpop.f32.mrf.mxu0 }
 0x6de   : > { %v2152_v3 = vadd.f32 %v2145_v62, %v2098_v1  ;;  %v551_v43 = vadd.f32 %v550_v40, %v3094_v45  ;;  %v552_v52 = vadd.f32 %v550_v40, %v3096_v50 }
 0x6df   : > { %v2744_v2 = vpop.f32.mrf.mxu0 }
 0x6e0   : > { %v2210_v7 = vadd.f32 %v2203_v37, %v2152_v3 }
 0x6e1   : > { %v2148_v4 = vpop.f32.mrf.mxu0 }
 0x6e2   : > { %v2153_v19 = vadd.f32 %v2148_v4, %v2099_v5 }
 0x6e3   : > { %v2745_v36 = vpop.f32.mrf.mxu0 }
 0x6e4   : > { %v2211_v11 = vadd.f32 %v2206_v44, %v2153_v19 }
 0x6e5   : > { %v2257_v8 = vpop.f32.mrf.mxu0 }
 0x6e6   : > { %v2264_v10 = vadd.f32 %v2257_v8, %v2210_v7 }
 0x6e7   : > { %v2756_v22 = vpop.f32.mrf.mxu0 }
 0x6e8   : > { %v2273_v6 = vadd.f32 %v2531_v9, %v2264_v10 }
 0x6e9   : > { %v2260_v13 = vpop.f32.mrf.mxu0 }
 0x6ea   : > { %v2280_v47 = vmul.f32 2.0, %v2273_v6  ;;  %v2265_v14 = vadd.f32 %v2260_v13, %v2211_v11 }
 0x6eb   : > { %v2757_v15 = vpop.f32.mrf.mxu0 }
 0x6ec   : > { %v2282_v16 = vsel %vm3353_vm13, %v2273_v6, %v2280_v47  ;;  %v2274_v17 = vadd.f32 %v2531_v9, %v2265_v14 }
 0x6ed   : > { %v2532_v18 = vmul.f32 -1.442695, %v2282_v16 }
 0x6ee   : > { %v2281_v20 = vmul.f32 2.0, %v2274_v17 }
 0x6ef   : > { %2833 = vpow2.f32 %v2532_v18 }
 0x6f0   : > { %v2283_v21 = vsel %vm3353_vm13, %v2274_v17, %v2281_v20 }
 0x6f1   : > { %v2533_v23 = vmul.f32 -1.442695, %v2283_v21 }
 0x6f3   : > { %2835 = vpow2.f32 %v2533_v23 }
 0x6fc   : > { %v2834_v24 = vpop.eup %2833 }
 0x6fd   : > { %v2290_v25 = vadd.f32 1.0, %v2834_v24 }
 0x6ff   : > { %2837 = vrcp.f32 %v2290_v25 }
 0x700   : > { %v2836_v26 = vpop.eup %2835 }
 0x701   : > { %v2291_v27 = vadd.f32 1.0, %v2836_v26 }
 0x703   : > { %2839 = vrcp.f32 %v2291_v27 }
 0x70c   : > { %v2838_v28 = vpop.eup %2837 }
 0x70d   : > { %v2296_v29 = vmul.f32 2.0, %v2838_v28 }
 0x70f   : > { %v2534_v32 = vadd.f32 -1.0, %v2296_v29 }
 0x710   : > { %v2840_v30 = vpop.eup %2839 }
 0x711   : > { %v2297_v31 = vmul.f32 2.0, %v2840_v30  ;;  %v2300_v34 = vsel %vm3353_vm13, %v2838_v28, %v2534_v32 }
 0x713   : > { %v2535_v33 = vadd.f32 -1.0, %v2297_v31 }
 0x715   : > { %v2301_v35 = vsel %vm3353_vm13, %v2840_v30, %v2535_v33 }
 0x716   : > { %v2302_v59 = vpack.c.bf16 %v2301_v35, %v2300_v34 }
 0x718   : > { %2763 = vmatmul.mubr.msk.bf16.vlgmr.msra.gmra.mxu1 %vm2315_vm14, %v2302_v59 }
 0x7d8   : > { %v2356_v42 = vpop.f32.mrf.mxu1 }
 0x7d9   : > { %v2367_v46 = vadd.f32 %v2366_v41, %v2356_v42 }
 0x7da   : > { %v2764_v48 = vpop.f32.mrf.mxu1 }
 0x7db   : > { %v2369_v37 = vadd.f32 %v2367_v46, %v551_v43 }
 0x7dc   : > { %v2359_v49 = vpop.f32.mrf.mxu1 }
 0x7dd   : > { %v2549_v51 = vpack.c.bf16 %v2369_v37, %v2369_v37  ;;  %v2368_v53 = vadd.f32 %v2366_v41, %v2359_v49 }
 0x7de   : > { %v2765_v54 = vpop.f32.mrf.mxu1 }
 0x7df   : > { %2379 = vst.msk [vmem:[%s406_s26] sm:$0xf] %vm425_vm15, %v2549_v51  ;;  %v2370_v56 = vadd.f32 %v2368_v53, %v552_v52 }
 0x7e1   : > { %v2550_v57 = vpack.c.bf16 %v2370_v56, %v2370_v56 }
 0x7e3   : > { %2380 = vst.msk [vmem:[%s406_s26 + $0x4] sm:$0xf] %vm425_vm15, %v2550_v57 }
 0x7e4 PF: > { %s22_s13 = sadd.s32 1, %s2908_s13  }
 0x7e5   : > { %p19_p2 = scmp.ge.s32.totalorder %s22_s13, 4  }
 0x7e7   :  { %21 = sbr.rel (!%p19_p2) target bundleno = 2 (0x2), region = 120 }
 0x7ec   :  { %2402 = vsyncpa [#allocation5], 1 }
 0x7ed   :  { %2404 = vsyncpa [#allocation5 + $0x1], 1 }
 0x7ee   :  { %2405 = vsyncpa [#allocation7], 1 }

</bundles_post_ra>
